<compile_context>
chip_gen: v7x
topology: tpu7x:2x2x1
jax: 0.10.0
libtpu: 0.0.40
codegen_flags: <defaults>
</compile_context>

<pallas_src>
import functools

import jax
import jax.numpy as jnp
from jax import lax
from jax.experimental import pallas as pl
from jax.experimental.pallas import tpu as pltpu

EPS = 1e-5


def _round_up(x, m):
    return (x + m - 1) // m * m


def _cdiv(a, b):
    return (a + b - 1) // b


def _layernorm(h, gamma, beta):
    mu = jnp.mean(h, axis=-1, keepdims=True)
    var = jnp.mean((h - mu) ** 2, axis=-1, keepdims=True)
    return (h - mu) * lax.rsqrt(var + EPS) * gamma + beta


def _user_scatter_kernel(
    # streamed over the grid (double-buffered by BlockSpec)
    user_ref,    # [TNr, PK*F]  bf16  PK lane-packed user nodes per row (zero-padded tail)
    ids_ref,     # [PK, TNr]    i32   graph id of node PK*r+j at [j, r]  (padding id == B)
    # resident params (constant index_map)
    w1_ref,      # [PK*F, PK*F] bf16  block-diagonal level_readout W1
    b1_ref,      # [1, PK*F]    f32   tiled bias
    g1_ref,      # [1, PK*F]    f32   tiled LayerNorm gamma
    be1_ref,     # [1, PK*F]    f32   tiled LayerNorm beta
    segm_ref,    # [PK*F, PK*F] bf16  block-diagonal per-segment averaging matrix (1/F blocks)
    w2_ref,      # [PK*F, PK*Lp] bf16 block-diagonal [W2 | 0] (zero "count" column)
    b2_ref,      # [1, PK*Lp]   f32   tiled [b2 | 1 | 0]  (the 1 generates the user count)
    # output = per-lane-slot partial accumulators, resident across the reduction axis
    out_ref,     # [PK, B, PK*Lp] f32
):
    n = pl.program_id(1)
    PK, B, _ = out_ref.shape
    TNr = user_ref.shape[0]

    @pl.when(n == 0)
    def _init():
        out_ref[...] = jnp.zeros_like(out_ref)

    # per-node MLP (PK nodes per row): Linear -> ReLU -> LayerNorm(per F-lane segment)
    #                                  -> Linear -> ReLU
    x = user_ref[...]                                                     # bf16 [TNr, PK*F]
    h = jnp.dot(x, w1_ref[...], preferred_element_type=jnp.float32) + b1_ref[...]
    h = jnp.maximum(h, 0.0)
    # segment mean / variance via block-diagonal averaging matmuls on the MXU
    mu = jnp.dot(h.astype(jnp.bfloat16), segm_ref[...],
                 preferred_element_type=jnp.float32)
    c = h - mu
    var = jnp.dot((c * c).astype(jnp.bfloat16), segm_ref[...],
                  preferred_element_type=jnp.float32)
    hn = c * lax.rsqrt(var + EPS) * g1_ref[...] + be1_ref[...]
    ro = jnp.dot(hn.astype(jnp.bfloat16), w2_ref[...],
                 preferred_element_type=jnp.float32) + b2_ref[...]
    ro = jnp.maximum(ro, 0.0)                  # trailing ReLU; count column stays 1.0

    # scatter-sum over graphs: one f32 one-hot matmul per lane slot j (full-width rhs, no
    # big-array slicing).  Slot j's useful lanes are extracted and slots summed in XLA.
    ids = ids_ref[...]                                                    # [PK, TNr]
    b_iota = lax.broadcasted_iota(jnp.int32, (B, TNr), 0)                 # [B, TNr]
    for j in range(PK):
        oh = (ids[j:j + 1, :] == b_iota).astype(jnp.float32)              # [B, TNr]
        out_ref[j] += jnp.dot(oh, ro, preferred_element_type=jnp.float32)  # [B, PK*Lp]


def multilevel_readout(user_x, batch_ids_row, time_x, params, *,
                       num_time_nodes, num_levels, tile_n=8192, num_core_splits=2):
    """user_x: [N, F] f32; batch_ids_row: [1, N] i32; time_x: [B*num_time_nodes, F] f32."""
    N, F = user_x.shape
    B = time_x.shape[0] // num_time_nodes
    L = num_levels

    # x['node']['time'].view(-1, T, F)[:, -1, :] — cheap reshape/slice glue (XLA).
    time_last = time_x.reshape(B, num_time_nodes, F)[:, -1, :]

    # ---- lane packing: PK nodes per 128-lane row ----
    PK = 128 // F if (F <= 128 and 128 % F == 0) else 1
    LANES = PK * F
    Lp = max(L + 1, max(1, 128 // PK))     # per-node output block: [L readouts | count | pad]
    WOUT = PK * Lp
    S = max(1, num_core_splits)            # v7x: 2 TensorCores; harmless on v5e/v6e

    # ---- pad-waste-aware tile sizing over packed rows ----
    Nr = _cdiv(N, PK)
    tnr_target = max(128, _cdiv(tile_n, PK))
    n_tiles = _round_up(max(1, _cdiv(Nr, tnr_target)), S)
    TNr = _round_up(_cdiv(Nr, n_tiles), 128)
    Nr_pad = n_tiles * TNr
    tiles_per_split = n_tiles // S
    N_pad = Nr_pad * PK

    user_pk = jnp.pad(user_x, ((0, N_pad - N), (0, 0))).reshape(Nr_pad, LANES)
    user_pk = user_pk.astype(jnp.bfloat16)
    # ids_pk[j, r] = graph id of node PK*r + j; padded nodes carry id == B (match nothing)
    ids_pk = jnp.pad(batch_ids_row[0].astype(jnp.int32), (0, N_pad - N),
                     constant_values=B).reshape(Nr_pad, PK).T              # [PK, Nr_pad]

    # ---- block-diagonal per-node weights (bf16 MXU operands) ----
    eye = jnp.eye(PK, dtype=jnp.float32)
    w1_blk = jnp.kron(eye, params["lr_w1"]).astype(jnp.bfloat16)           # [LANES, LANES]
    b1_t = jnp.tile(params["lr_b1"], (1, PK))
    g1_t = jnp.tile(params["lr_g1"], (1, PK))
    be1_t = jnp.tile(params["lr_be1"], (1, PK))
    segm = jnp.kron(eye, jnp.full((F, F), 1.0 / F, jnp.float32)).astype(jnp.bfloat16)
    w2_node = jnp.concatenate(
        [params["lr_w2"], jnp.zeros((F, Lp - L), jnp.float32)], axis=1)    # [F, Lp]
    b2_node = jnp.concatenate(
        [params["lr_b2"], jnp.ones((1, 1), jnp.float32),
         jnp.zeros((1, Lp - L - 1), jnp.float32)], axis=1)                 # [1, Lp]
    w2_blk = jnp.kron(eye, w2_node).astype(jnp.bfloat16)                   # [LANES, WOUT]
    b2_t = jnp.tile(b2_node, (1, PK))                                      # [1, WOUT]

    def _const_spec(arr):
        return pl.BlockSpec(arr.shape, lambda c, n, _nd=arr.ndim: (0,) * _nd)

    residents = (w1_blk, b1_t, g1_t, be1_t, segm, w2_blk, b2_t)
    in_specs = [
        pl.BlockSpec((TNr, LANES), lambda c, n: (c * tiles_per_split + n, 0)),
        pl.BlockSpec((PK, TNr), lambda c, n: (0, c * tiles_per_split + n)),
    ] + [_const_spec(a) for a in residents]

    partial = pl.pallas_call(
        _user_scatter_kernel,
        out_shape=jax.ShapeDtypeStruct((S * PK, B, WOUT), jnp.float32),
        grid=(S, tiles_per_split),
        in_specs=in_specs,
        out_specs=pl.BlockSpec((PK, B, WOUT), lambda c, n: (c, 0, 0)),
        compiler_params=pltpu.CompilerParams(
            dimension_semantics=("parallel", "arbitrary"),
            vmem_limit_bytes=32 * 1024 * 1024),
    )(user_pk, ids_pk, *residents)

    # ---- XLA combine + tiny epilogue (level_mlp, argmax, softmax-weighted prediction) ----
    partial = partial.reshape(S, PK, B, WOUT)
    bias_cnt = sum(partial[:, j, :, j * Lp:(j + 1) * Lp] for j in range(PK))   # [S, B, Lp]
    bias_cnt = jnp.sum(bias_cnt, axis=0)                                        # [B, Lp]
    bias = bias_cnt[:, :L]                                                      # [B, L]
    num_users = bias_cnt[:, L:L + 1]                                            # [B, 1]  exact

    lvl_in = jnp.concatenate([num_users, time_last], axis=1)                    # [B, 1+F]
    hh = jnp.maximum(lvl_in @ params["lm_w1"] + params["lm_b1"], 0.0)           # ReLU
    hh = _layernorm(hh, params["lm_g1"], params["lm_be1"])                      # Dropout = id
    level_logist = hh @ params["lm_w2"] + params["lm_b2"]                       # [B, L]
    levels = jnp.argmax(level_logist, axis=1).astype(jnp.int32)
    pred = jnp.sum(jax.nn.softmax(level_logist, axis=1) * bias, axis=1)

    return {
        "pred": pred,
        "x": {"node": {"user": user_x, "time": time_x}},
        "level_logist": level_logist,
        "levels": levels,
    }


def reference(user_x, batch_ids_row, time_x, params, *, num_time_nodes, num_levels, B):
    """Pure-JAX f32 reference mirroring the PyTorch forward (eval mode)."""
    N, F = user_x.shape
    ids = batch_ids_row[0]
    one_hot = (ids[None, :] == jnp.arange(B)[:, None]).astype(jnp.float32)      # [B, N]
    num_users = one_hot.sum(axis=-1, keepdims=True)                             # [B, 1]
    time_last = time_x.reshape(B, num_time_nodes, F)[:, -1, :]

    lvl_in = jnp.concatenate([num_users, time_last], axis=1)                    # [B, 1+F]
    h = jnp.maximum(lvl_in @ params["lm_w1"] + params["lm_b1"], 0.0)
    h = _layernorm(h, params["lm_g1"], params["lm_be1"])
    level_logist = h @ params["lm_w2"] + params["lm_b2"]
    levels = jnp.argmax(level_logist, axis=1)

    g = jnp.maximum(user_x @ params["lr_w1"] + params["lr_b1"], 0.0)
    g = _layernorm(g, params["lr_g1"], params["lr_be1"])
    ro = jnp.maximum(g @ params["lr_w2"] + params["lr_b2"], 0.0)
    bias = one_hot @ ro                                                         # [B, L]
    pred = jnp.sum(jax.nn.softmax(level_logist, axis=1) * bias, axis=1)
    return pred, level_logist, levels


def make_params(key, in_feats, num_levels):
    F, L, H = in_feats, num_levels, 1 + in_feats
    ks = jax.random.split(key, 8)
    u = lambda k, shape, fan_in: jax.random.uniform(
        k, shape, jnp.float32, -1.0 / jnp.sqrt(fan_in), 1.0 / jnp.sqrt(fan_in))
    return {
        # level_mlp: Linear(H,H) -> ReLU -> LayerNorm(H) -> Dropout -> Linear(H,L)
        "lm_w1": u(ks[0], (H, H), H),
        "lm_b1": u(ks[1], (1, H), H),
        "lm_g1": jnp.ones((1, H), jnp.float32),
        "lm_be1": jnp.zeros((1, H), jnp.float32),
        "lm_w2": u(ks[2], (H, L), H),
        "lm_b2": u(ks[3], (1, L), H),
        # level_readout: Linear(F,F) -> ReLU -> LayerNorm(F) -> Dropout -> Linear(F,L) -> ReLU
        "lr_w1": u(ks[4], (F, F), F),
        "lr_b1": u(ks[5], (1, F), F),
        "lr_g1": jnp.ones((1, F), jnp.float32),
        "lr_be1": jnp.zeros((1, F), jnp.float32),
        "lr_w2": u(ks[6], (F, L), F),
        "lr_b2": u(ks[7], (1, L), F),
    }


if __name__ == "__main__":
    import numpy as np

    B = 2                 # graphs per batch
    in_feats = 32
    num_time_nodes = 8
    num_levels = 10
    N = 16                # total user nodes across the batch

    key = jax.random.PRNGKey(0)
    k_user, k_time, k_ids, k_par = jax.random.split(key, 4)

    user_x = jax.random.normal(k_user, (N, in_feats), jnp.float32)
    time_x = jax.random.normal(k_time, (B * num_time_nodes, in_feats), jnp.float32)
    batch_ids = jnp.sort(jax.random.randint(k_ids, (N,), 0, B, jnp.int32))
    batch_ids_row = batch_ids[None, :]

    params = make_params(k_par, in_feats, num_levels)

    run = functools.partial(multilevel_readout,
                            num_time_nodes=num_time_nodes, num_levels=num_levels)
    out = run(user_x, batch_ids_row, time_x, params)
    jax.block_until_ready(out)

    ref_pred, ref_logist, ref_levels = reference(
        user_x, batch_ids_row, time_x, params,
        num_time_nodes=num_time_nodes, num_levels=num_levels, B=B)

    # level_mlp path is exact f32 (count is exact) -> tight; pred path uses bf16 MXU operands
    # for the per-node MLP -> looser tolerance.
    np.testing.assert_allclose(np.asarray(out["level_logist"]), np.asarray(ref_logist),
                               rtol=1e-4, atol=1e-4)
    np.testing.assert_array_equal(np.asarray(out["levels"]), np.asarray(ref_levels))
    np.testing.assert_allclose(np.asarray(out["pred"]), np.asarray(ref_pred),
                               rtol=5e-2, atol=5e-2)

    # Multi-tile / multi-split check: small tile_n forces several reduction steps per core
    # and a node count that is not a multiple of the 4-node lane packing.
    N2 = 1501
    k2a, k2b = jax.random.split(jax.random.PRNGKey(1))
    user_x2 = jax.random.normal(k2a, (N2, in_feats), jnp.float32)
    batch_ids2 = jnp.sort(jax.random.randint(k2b, (N2,), 0, B, jnp.int32))
    out2 = multilevel_readout(user_x2, batch_ids2[None, :], time_x, params,
                              num_time_nodes=num_time_nodes, num_levels=num_levels,
                              tile_n=512)
    jax.block_until_ready(out2)
    ref_pred2, ref_logist2, ref_levels2 = reference(
        user_x2, batch_ids2[None, :], time_x, params,
        num_time_nodes=num_time_nodes, num_levels=num_levels, B=B)
    np.testing.assert_allclose(np.asarray(out2["level_logist"]), np.asarray(ref_logist2),
                               rtol=1e-4, atol=1e-4)
    np.testing.assert_array_equal(np.asarray(out2["levels"]), np.asarray(ref_levels2))
    np.testing.assert_allclose(np.asarray(out2["pred"]), np.asarray(ref_pred2),
                               rtol=5e-2, atol=5e-2)

    print("KERNEL_OK")
</pallas_src>

<mosaic_0001>
module attributes {stable_mosaic.version = 11 : i64} {
  func.func @_user_scatter_kernel(%arg0: i32, %arg1: i32, %arg2: memref<128x128xbf16, #tpu.memory_space<vmem>>, %arg3: memref<4x128xi32, #tpu.memory_space<vmem>>, %arg4: memref<128x128xbf16, #tpu.memory_space<vmem>>, %arg5: memref<1x128xf32, #tpu.memory_space<vmem>>, %arg6: memref<1x128xf32, #tpu.memory_space<vmem>>, %arg7: memref<1x128xf32, #tpu.memory_space<vmem>>, %arg8: memref<128x128xbf16, #tpu.memory_space<vmem>>, %arg9: memref<128x128xbf16, #tpu.memory_space<vmem>>, %arg10: memref<1x128xf32, #tpu.memory_space<vmem>>, %arg11: memref<4x2x128xf32, #tpu.memory_space<vmem>>) attributes {dimension_semantics = [#tpu.dimension_semantics<parallel>, #tpu.dimension_semantics<arbitrary>], iteration_bounds = array<i64: 2, 1>, scalar_prefetch = 0 : i64, scratch_operands = 0 : i64, tpu.core_type = #tpu.core_type<tc>, window_params = [{transform_indices = @transform_0, window_bounds = array<i64: 128, 128>}, {transform_indices = @transform_1, window_bounds = array<i64: 4, 128>}, {pipeline_mode = #tpu.pipeline_mode<synchronous>, transform_indices = @transform_2, window_bounds = array<i64: 128, 128>}, {pipeline_mode = #tpu.pipeline_mode<synchronous>, transform_indices = @transform_3, window_bounds = array<i64: 1, 128>}, {pipeline_mode = #tpu.pipeline_mode<synchronous>, transform_indices = @transform_4, window_bounds = array<i64: 1, 128>}, {pipeline_mode = #tpu.pipeline_mode<synchronous>, transform_indices = @transform_5, window_bounds = array<i64: 1, 128>}, {pipeline_mode = #tpu.pipeline_mode<synchronous>, transform_indices = @transform_6, window_bounds = array<i64: 128, 128>}, {pipeline_mode = #tpu.pipeline_mode<synchronous>, transform_indices = @transform_7, window_bounds = array<i64: 128, 128>}, {pipeline_mode = #tpu.pipeline_mode<synchronous>, transform_indices = @transform_8, window_bounds = array<i64: 1, 128>}, {transform_indices = @transform_9, window_bounds = array<i64: 4, 2, 128>}]} {
    %c0_i32 = arith.constant 0 : i32
    %0 = arith.cmpi eq, %arg1, %c0_i32 : i32
    %1 = arith.extui %0 : i1 to i32
    %c0_i32_0 = arith.constant 0 : i32
    %2 = arith.cmpi ne, %1, %c0_i32_0 : i32
    scf.if %2 {
      %cst_51 = arith.constant 0.000000e+00 : f32
      %87 = vector.broadcast %cst_51 : f32 to vector<4x2x128xf32>
      %c0_52 = arith.constant 0 : index
      %c0_53 = arith.constant 0 : index
      %c0_54 = arith.constant 0 : index
      %88 = vector.load %arg11[%c0_52, %c0_53, %c0_54] : memref<4x2x128xf32, #tpu.memory_space<vmem>>, vector<4x2x128xf32>
      tpu.vector_store %arg11[%c0_52, %c0_53, %c0_54], %87 {strides = array<i32>} : memref<4x2x128xf32, #tpu.memory_space<vmem>>, vector<4x2x128xf32>,
    } else {
    }
    %c0 = arith.constant 0 : index
    %c0_1 = arith.constant 0 : index
    %3 = vector.load %arg2[%c0, %c0_1] : memref<128x128xbf16, #tpu.memory_space<vmem>>, vector<128x128xbf16>
    %c0_2 = arith.constant 0 : index
    %c0_3 = arith.constant 0 : index
    %4 = vector.load %arg4[%c0_2, %c0_3] : memref<128x128xbf16, #tpu.memory_space<vmem>>, vector<128x128xbf16>
    %cst = arith.constant dense<0.000000e+00> : vector<128x128xf32>
    %5 = tpu.matmul %3, %4, %cst {dimension_numbers = #tpu.dot_dimension_numbers<[1], [0], [0], [1], [0, 0, 1, 1], [], []>} : vector<128x128xbf16>, vector<128x128xbf16>, vector<128x128xf32> -> vector<128x128xf32>
    %c0_4 = arith.constant 0 : index
    %c0_5 = arith.constant 0 : index
    %6 = vector.load %arg5[%c0_4, %c0_5] : memref<1x128xf32, #tpu.memory_space<vmem>>, vector<1x128xf32>
    %7 = vector.broadcast %6 : vector<1x128xf32> to vector<128x128xf32>
    %8 = arith.addf %5, %7 : vector<128x128xf32>
    %cst_6 = arith.constant 0.000000e+00 : f32
    %9 = vector.broadcast %cst_6 : f32 to vector<128x128xf32>
    %10 = arith.maximumf %8, %9 : vector<128x128xf32>
    %11 = arith.truncf %10 : vector<128x128xf32> to vector<128x128xbf16>
    %c0_7 = arith.constant 0 : index
    %c0_8 = arith.constant 0 : index
    %12 = vector.load %arg8[%c0_7, %c0_8] : memref<128x128xbf16, #tpu.memory_space<vmem>>, vector<128x128xbf16>
    %cst_9 = arith.constant dense<0.000000e+00> : vector<128x128xf32>
    %13 = tpu.matmul %11, %12, %cst_9 {dimension_numbers = #tpu.dot_dimension_numbers<[1], [0], [0], [1], [0, 0, 1, 1], [], []>} : vector<128x128xbf16>, vector<128x128xbf16>, vector<128x128xf32> -> vector<128x128xf32>
    %14 = arith.subf %10, %13 : vector<128x128xf32>
    %15 = arith.mulf %14, %14 : vector<128x128xf32>
    %16 = arith.truncf %15 : vector<128x128xf32> to vector<128x128xbf16>
    %c0_10 = arith.constant 0 : index
    %c0_11 = arith.constant 0 : index
    %17 = vector.load %arg8[%c0_10, %c0_11] : memref<128x128xbf16, #tpu.memory_space<vmem>>, vector<128x128xbf16>
    %cst_12 = arith.constant dense<0.000000e+00> : vector<128x128xf32>
    %18 = tpu.matmul %16, %17, %cst_12 {dimension_numbers = #tpu.dot_dimension_numbers<[1], [0], [0], [1], [0, 0, 1, 1], [], []>} : vector<128x128xbf16>, vector<128x128xbf16>, vector<128x128xf32> -> vector<128x128xf32>
    %cst_13 = arith.constant 9.99999974E-6 : f32
    %19 = vector.broadcast %cst_13 : f32 to vector<128x128xf32>
    %20 = arith.addf %18, %19 : vector<128x128xf32>
    %21 = math.rsqrt %20 : vector<128x128xf32>
    %22 = arith.mulf %14, %21 : vector<128x128xf32>
    %c0_14 = arith.constant 0 : index
    %c0_15 = arith.constant 0 : index
    %23 = vector.load %arg6[%c0_14, %c0_15] : memref<1x128xf32, #tpu.memory_space<vmem>>, vector<1x128xf32>
    %24 = vector.broadcast %23 : vector<1x128xf32> to vector<128x128xf32>
    %25 = arith.mulf %22, %24 : vector<128x128xf32>
    %c0_16 = arith.constant 0 : index
    %c0_17 = arith.constant 0 : index
    %26 = vector.load %arg7[%c0_16, %c0_17] : memref<1x128xf32, #tpu.memory_space<vmem>>, vector<1x128xf32>
    %27 = vector.broadcast %26 : vector<1x128xf32> to vector<128x128xf32>
    %28 = arith.addf %25, %27 : vector<128x128xf32>
    %29 = arith.truncf %28 : vector<128x128xf32> to vector<128x128xbf16>
    %c0_18 = arith.constant 0 : index
    %c0_19 = arith.constant 0 : index
    %30 = vector.load %arg9[%c0_18, %c0_19] : memref<128x128xbf16, #tpu.memory_space<vmem>>, vector<128x128xbf16>
    %cst_20 = arith.constant dense<0.000000e+00> : vector<128x128xf32>
    %31 = tpu.matmul %29, %30, %cst_20 {dimension_numbers = #tpu.dot_dimension_numbers<[1], [0], [0], [1], [0, 0, 1, 1], [], []>} : vector<128x128xbf16>, vector<128x128xbf16>, vector<128x128xf32> -> vector<128x128xf32>
    %c0_21 = arith.constant 0 : index
    %c0_22 = arith.constant 0 : index
    %32 = vector.load %arg10[%c0_21, %c0_22] : memref<1x128xf32, #tpu.memory_space<vmem>>, vector<1x128xf32>
    %33 = vector.broadcast %32 : vector<1x128xf32> to vector<128x128xf32>
    %34 = arith.addf %31, %33 : vector<128x128xf32>
    %cst_23 = arith.constant 0.000000e+00 : f32
    %35 = vector.broadcast %cst_23 : f32 to vector<128x128xf32>
    %36 = arith.maximumf %34, %35 : vector<128x128xf32>
    %c0_24 = arith.constant 0 : index
    %c0_25 = arith.constant 0 : index
    %37 = vector.load %arg3[%c0_24, %c0_25] : memref<4x128xi32, #tpu.memory_space<vmem>>, vector<4x128xi32>
    %38 = tpu.iota {dimensions = array<i32: 0>} : vector<2x128xi32>
    %39 = vector.extract_strided_slice %37 {offsets = [0, 0], sizes = [1, 128], strides = [1, 1]} : vector<4x128xi32> to vector<1x128xi32>
    %40 = vector.broadcast %39 : vector<1x128xi32> to vector<2x128xi32>
    %41 = arith.cmpi eq, %40, %38 : vector<2x128xi32>
    %42 = arith.extui %41 : vector<2x128xi1> to vector<2x128xi32>
    %43 = arith.sitofp %42 : vector<2x128xi32> to vector<2x128xf32>
    %c0_26 = arith.constant 0 : index
    %c0_27 = arith.constant 0 : index
    %c0_28 = arith.constant 0 : index
    %44 = vector.load %arg11[%c0_26, %c0_27, %c0_28] : memref<4x2x128xf32, #tpu.memory_space<vmem>>, vector<1x2x128xf32>
    %45 = vector.shape_cast %44 : vector<1x2x128xf32> to vector<2x128xf32>
    %cst_29 = arith.constant dense<0.000000e+00> : vector<2x128xf32>
    %46 = tpu.matmul %43, %36, %cst_29 {dimension_numbers = #tpu.dot_dimension_numbers<[1], [0], [0], [1], [0, 0, 1, 1], [], []>} : vector<2x128xf32>, vector<128x128xf32>, vector<2x128xf32> -> vector<2x128xf32>
    %47 = arith.addf %45, %46 : vector<2x128xf32>
    %c0_30 = arith.constant 0 : index
    %c0_31 = arith.constant 0 : index
    %c0_32 = arith.constant 0 : index
    %48 = vector.load %arg11[%c0_30, %c0_31, %c0_32] : memref<4x2x128xf32, #tpu.memory_space<vmem>>, vector<1x2x128xf32>
    %49 = vector.shape_cast %48 : vector<1x2x128xf32> to vector<2x128xf32>
    %50 = vector.shape_cast %47 : vector<2x128xf32> to vector<1x2x128xf32>
    tpu.vector_store %arg11[%c0_30, %c0_31, %c0_32], %50 {strides = array<i32>} : memref<4x2x128xf32, #tpu.memory_space<vmem>>, vector<1x2x128xf32>,
    %51 = vector.extract_strided_slice %37 {offsets = [1, 0], sizes = [1, 128], strides = [1, 1]} : vector<4x128xi32> to vector<1x128xi32>
    %52 = vector.broadcast %51 : vector<1x128xi32> to vector<2x128xi32>
    %53 = arith.cmpi eq, %52, %38 : vector<2x128xi32>
    %54 = arith.extui %53 : vector<2x128xi1> to vector<2x128xi32>
    %55 = arith.sitofp %54 : vector<2x128xi32> to vector<2x128xf32>
    %c1 = arith.constant 1 : index
    %c0_33 = arith.constant 0 : index
    %c0_34 = arith.constant 0 : index
    %56 = vector.load %arg11[%c1, %c0_33, %c0_34] : memref<4x2x128xf32, #tpu.memory_space<vmem>>, vector<1x2x128xf32>
    %57 = vector.shape_cast %56 : vector<1x2x128xf32> to vector<2x128xf32>
    %cst_35 = arith.constant dense<0.000000e+00> : vector<2x128xf32>
    %58 = tpu.matmul %55, %36, %cst_35 {dimension_numbers = #tpu.dot_dimension_numbers<[1], [0], [0], [1], [0, 0, 1, 1], [], []>} : vector<2x128xf32>, vector<128x128xf32>, vector<2x128xf32> -> vector<2x128xf32>
    %59 = arith.addf %57, %58 : vector<2x128xf32>
    %c1_36 = arith.constant 1 : index
    %c0_37 = arith.constant 0 : index
    %c0_38 = arith.constant 0 : index
    %60 = vector.load %arg11[%c1_36, %c0_37, %c0_38] : memref<4x2x128xf32, #tpu.memory_space<vmem>>, vector<1x2x128xf32>
    %61 = vector.shape_cast %60 : vector<1x2x128xf32> to vector<2x128xf32>
    %62 = vector.shape_cast %59 : vector<2x128xf32> to vector<1x2x128xf32>
    tpu.vector_store %arg11[%c1_36, %c0_37, %c0_38], %62 {strides = array<i32>} : memref<4x2x128xf32, #tpu.memory_space<vmem>>, vector<1x2x128xf32>,
    %63 = vector.extract_strided_slice %37 {offsets = [2, 0], sizes = [1, 128], strides = [1, 1]} : vector<4x128xi32> to vector<1x128xi32>
    %64 = vector.broadcast %63 : vector<1x128xi32> to vector<2x128xi32>
    %65 = arith.cmpi eq, %64, %38 : vector<2x128xi32>
    %66 = arith.extui %65 : vector<2x128xi1> to vector<2x128xi32>
    %67 = arith.sitofp %66 : vector<2x128xi32> to vector<2x128xf32>
    %c2 = arith.constant 2 : index
    %c0_39 = arith.constant 0 : index
    %c0_40 = arith.constant 0 : index
    %68 = vector.load %arg11[%c2, %c0_39, %c0_40] : memref<4x2x128xf32, #tpu.memory_space<vmem>>, vector<1x2x128xf32>
    %69 = vector.shape_cast %68 : vector<1x2x128xf32> to vector<2x128xf32>
    %cst_41 = arith.constant dense<0.000000e+00> : vector<2x128xf32>
    %70 = tpu.matmul %67, %36, %cst_41 {dimension_numbers = #tpu.dot_dimension_numbers<[1], [0], [0], [1], [0, 0, 1, 1], [], []>} : vector<2x128xf32>, vector<128x128xf32>, vector<2x128xf32> -> vector<2x128xf32>
    %71 = arith.addf %69, %70 : vector<2x128xf32>
    %c2_42 = arith.constant 2 : index
    %c0_43 = arith.constant 0 : index
    %c0_44 = arith.constant 0 : index
    %72 = vector.load %arg11[%c2_42, %c0_43, %c0_44] : memref<4x2x128xf32, #tpu.memory_space<vmem>>, vector<1x2x128xf32>
    %73 = vector.shape_cast %72 : vector<1x2x128xf32> to vector<2x128xf32>
    %74 = vector.shape_cast %71 : vector<2x128xf32> to vector<1x2x128xf32>
    tpu.vector_store %arg11[%c2_42, %c0_43, %c0_44], %74 {strides = array<i32>} : memref<4x2x128xf32, #tpu.memory_space<vmem>>, vector<1x2x128xf32>,
    %75 = vector.extract_strided_slice %37 {offsets = [3, 0], sizes = [1, 128], strides = [1, 1]} : vector<4x128xi32> to vector<1x128xi32>
    %76 = vector.broadcast %75 : vector<1x128xi32> to vector<2x128xi32>
    %77 = arith.cmpi eq, %76, %38 : vector<2x128xi32>
    %78 = arith.extui %77 : vector<2x128xi1> to vector<2x128xi32>
    %79 = arith.sitofp %78 : vector<2x128xi32> to vector<2x128xf32>
    %c3 = arith.constant 3 : index
    %c0_45 = arith.constant 0 : index
    %c0_46 = arith.constant 0 : index
    %80 = vector.load %arg11[%c3, %c0_45, %c0_46] : memref<4x2x128xf32, #tpu.memory_space<vmem>>, vector<1x2x128xf32>
    %81 = vector.shape_cast %80 : vector<1x2x128xf32> to vector<2x128xf32>
    %cst_47 = arith.constant dense<0.000000e+00> : vector<2x128xf32>
    %82 = tpu.matmul %79, %36, %cst_47 {dimension_numbers = #tpu.dot_dimension_numbers<[1], [0], [0], [1], [0, 0, 1, 1], [], []>} : vector<2x128xf32>, vector<128x128xf32>, vector<2x128xf32> -> vector<2x128xf32>
    %83 = arith.addf %81, %82 : vector<2x128xf32>
    %c3_48 = arith.constant 3 : index
    %c0_49 = arith.constant 0 : index
    %c0_50 = arith.constant 0 : index
    %84 = vector.load %arg11[%c3_48, %c0_49, %c0_50] : memref<4x2x128xf32, #tpu.memory_space<vmem>>, vector<1x2x128xf32>
    %85 = vector.shape_cast %84 : vector<1x2x128xf32> to vector<2x128xf32>
    %86 = vector.shape_cast %83 : vector<2x128xf32> to vector<1x2x128xf32>
    tpu.vector_store %arg11[%c3_48, %c0_49, %c0_50], %86 {strides = array<i32>} : memref<4x2x128xf32, #tpu.memory_space<vmem>>, vector<1x2x128xf32>,
    return
  }
  func.func @transform_0(%arg0: i32, %arg1: i32) -> (i32, i32) {
    %c1_i32 = arith.constant 1 : i32
    %0 = arith.muli %arg0, %c1_i32 : i32
    %1 = arith.addi %0, %arg1 : i32
    %c0_i32 = arith.constant 0 : i32
    %c0_i32_0 = arith.constant 0 : i32
    return %1, %c0_i32 : i32, i32
  }
  func.func @transform_1(%arg0: i32, %arg1: i32) -> (i32, i32) {
    %c1_i32 = arith.constant 1 : i32
    %0 = arith.muli %arg0, %c1_i32 : i32
    %1 = arith.addi %0, %arg1 : i32
    %c0_i32 = arith.constant 0 : i32
    %c0_i32_0 = arith.constant 0 : i32
    return %c0_i32, %1 : i32, i32
  }
  func.func @transform_2(%arg0: i32, %arg1: i32) -> (i32, i32) {
    %c0_i32 = arith.constant 0 : i32
    %c0_i32_0 = arith.constant 0 : i32
    %c0_i32_1 = arith.constant 0 : i32
    return %c0_i32, %c0_i32_0 : i32, i32
  }
  func.func @transform_3(%arg0: i32, %arg1: i32) -> (i32, i32) {
    %c0_i32 = arith.constant 0 : i32
    %c0_i32_0 = arith.constant 0 : i32
    %c0_i32_1 = arith.constant 0 : i32
    return %c0_i32, %c0_i32_0 : i32, i32
  }
  func.func @transform_4(%arg0: i32, %arg1: i32) -> (i32, i32) {
    %c0_i32 = arith.constant 0 : i32
    %c0_i32_0 = arith.constant 0 : i32
    %c0_i32_1 = arith.constant 0 : i32
    return %c0_i32, %c0_i32_0 : i32, i32
  }
  func.func @transform_5(%arg0: i32, %arg1: i32) -> (i32, i32) {
    %c0_i32 = arith.constant 0 : i32
    %c0_i32_0 = arith.constant 0 : i32
    %c0_i32_1 = arith.constant 0 : i32
    return %c0_i32, %c0_i32_0 : i32, i32
  }
  func.func @transform_6(%arg0: i32, %arg1: i32) -> (i32, i32) {
    %c0_i32 = arith.constant 0 : i32
    %c0_i32_0 = arith.constant 0 : i32
    %c0_i32_1 = arith.constant 0 : i32
    return %c0_i32, %c0_i32_0 : i32, i32
  }
  func.func @transform_7(%arg0: i32, %arg1: i32) -> (i32, i32) {
    %c0_i32 = arith.constant 0 : i32
    %c0_i32_0 = arith.constant 0 : i32
    %c0_i32_1 = arith.constant 0 : i32
    return %c0_i32, %c0_i32_0 : i32, i32
  }
  func.func @transform_8(%arg0: i32, %arg1: i32) -> (i32, i32) {
    %c0_i32 = arith.constant 0 : i32
    %c0_i32_0 = arith.constant 0 : i32
    %c0_i32_1 = arith.constant 0 : i32
    return %c0_i32, %c0_i32_0 : i32, i32
  }
  func.func @transform_9(%arg0: i32, %arg1: i32) -> (i32, i32, i32) {
    %c0_i32 = arith.constant 0 : i32
    %c0_i32_0 = arith.constant 0 : i32
    %c0_i32_1 = arith.constant 0 : i32
    return %arg0, %c0_i32, %c0_i32_0 : i32, i32, i32
  }
}

</mosaic_0001>

<bundles_post_ra>
// kernel: tpu_custom_call.1
= control target key start
LH: loop header
LB: loop body
LE: loop exit
PB: predicated region body
PF: predicated region fallthrough
CT: control target
= control target key end

     0   :  { %s3481_s0 = inlined_call_operand.hbm [shape: bf16[256,128], index: 0, kind: input, shape index: {}]   ;;  %s3482_s1 = inlined_call_operand.hbm [shape: s32[4,256], index: 1, kind: input, shape index: {}]   ;;  %s3483_s2 = inlined_call_operand.hbm [shape: bf16[128,128], index: 2, kind: input, shape index: {}]   ;;  %s3484_s3 = inlined_call_operand.vmem [shape: f32[1,128], index: 3, kind: input, shape index: {}]   ;;  %s3485_s4 = inlined_call_operand.vmem [shape: f32[1,128], index: 4, kind: input, shape index: {}]   ;;  %s3486_s5 = inlined_call_operand.vmem [shape: f32[1,128], index: 5, kind: input, shape index: {}]   ;;  %s3487_s6 = inlined_call_operand.hbm [shape: bf16[128,128], index: 6, kind: input, shape index: {}]   ;;  %s3488_s7 = inlined_call_operand.hbm [shape: bf16[128,128], index: 7, kind: input, shape index: {}]   ;;  %s3489_s8 = inlined_call_operand.vmem [shape: f32[1,128], index: 8, kind: input, shape index: {}]   ;;  %s3490_s9 = inlined_call_operand.hbm [shape: f32[8,2,128], index: 9, kind: output, shape index: {}]  }
   0x1   :  { %3500 = sst [smem:[#allocation20_spill]] %s3481_s0 }
   0x2   :  { %3501 = sst [smem:[#allocation21_spill]] %s3483_s2 }
   0x3   :  { %3502 = sst [smem:[#allocation22_spill]] %s3487_s6 }
   0x4   :  { %3503 = sst [smem:[#allocation23_spill]] %s3488_s7 }
   0x5   :  { %3504 = sst [smem:[#allocation24_spill]] %s3489_s8 }
   0x6   :  { %3505 = sst [smem:[#allocation25_spill]] %s3490_s9 }
   0x7   :  { %14 = vsyncpa [#allocation3], 0 }
   0x8   :  { %16 = vsyncpa [#allocation3 + $0x1], 0 }
   0x9   :  { %17 = vsyncpa [#allocation6], 0 }
   0xa   :  { %19 = vsyncpa [#allocation6 + $0x1], 0 }
   0xb   :  { %20 = vsyncpa [#allocation9], 0 }
   0xc   :  { %21 = vsyncpa [#allocation4], 0 }
   0xd   :  { %23 = vsyncpa [#allocation4 + $0x1], 0  ;;  %s2806_s30 = smov 0   ;;  %s2808_s10 = smov 0  }
   0xe   :  { %s2810_s11 = smov 0   ;;  %s2812_s12 = smov 0  }
   0xf   :  { %s2814_s13 = smov 0   ;;  %s2816_s14 = smov 0  }
  0x10 LB: > { %3506 = sst [smem:[#allocation17_spill]] %s2720_s30  ;;  %s2837_s15 = sadd.s32 4294967295, %s2740_s14   ;;  %s2740_s14 = sphi %s2816_s14, %s29_s14   ;;  %s2736_s13 = sphi %s2814_s13, %s3542_s13   ;;  %s2732_s12 = sphi %s2812_s12, %s3541_s12   ;;  %s2728_s11 = sphi %s2810_s11, %s3540_s11   ;;  %s2724_s10 = sphi %s2808_s10, %s3539_s10   ;;  %s2720_s30 = sphi %s2806_s30, %s3538_s30  }
  0x11   : > { %3507 = sst [smem:[#allocation18_spill]] %s2732_s12  ;;  %s1761_s16 = sadd.s32 4294967294, %s2740_s14  }
  0x12   : > { %p63_p0 = scmp.ne.s32.totalorder %s2724_s10, %s2720_s30  ;;  %p3492_p1 = scmp.eq.s32.totalorder %s2837_s15, 0 }
  0x13   : > { %p268_p3 = scmp.eq.s32.totalorder %s1761_s16, 1  ;;  %p1762_p5 = scmp.ge.s32.totalorder %s2740_s14, 1 }
  0x14   : > { %p2846_p4 = por %p3492_p1, %p63_p0  ;;  %p275_p7 = scmp.lt.s32.totalorder %s2740_s14, 3 }
  0x15   : > { %p2851_p6 = por %p268_p3, %p63_p0  ;;  %s2742_s20 = smov [#allocation7]  }
  0x16   : > { %s3508_s17 = scalar_select %p2846_p4, 1, 0 }
  0x17   : > { %s3509_s18 = scalar_select %p2851_p6, 1, 0 }
  0x18   : > { %p2856_p8 = pnand %p1762_p5, %p275_p7  ;;  %s287_s21 = sshll.u32 %s2742_s20, 4  ;;  %s2860_s21 = int_to_ptr.vmem [resolvable:$true] %s287_s21 }
  0x19   : > { %3510 = sst [smem:[#allocation19_spill]] %s3509_s18  ;;  %s2743_s23 = smov [#allocation8]  }
  0x1a   : > { %s3511_s19 = scalar_select %p2856_p8, 1, 0 }
  0x1b   : > { %p2350_p9 = pneg %p2856_p8  ;;  %s309_s24 = sshll.u32 %s2743_s23, 4  ;;  %s2871_s24 = int_to_ptr.vmem [resolvable:$true] %s309_s24 }
  0x1c   : > { %s2744_s25 = smov [#allocation10]   ;;  %s3513_s2 = sld [smem:[#allocation21_spill]] }
  0x1d   : > { %p2867_p11 = pnand %p2350_p9, %p3492_p1  ;;  %s2873_s26 = sshll.u32 %s2744_s25, 4  ;;  %s323_s26 = int_to_ptr.vmem [resolvable:$true] %s2873_s26 }
  0x1f   : > { %p2883_p13 = pneg %p2867_p11 }
  0x22   : > { %s2502_s29 = scalar_lea.hbm %s3513_s2, 1024 }
  0x23   : > { %p2503_p12 = scmp.ne.s32.totalorder %s3513_s2, %s2502_s29  ;;  %p2509_p5 = scmp.lt.u32.totalorder %s2502_s29, %s3513_s2 }
  0x25   : > { %p2505_p0 = pnand %p2883_p13, %p2503_p12 }
  0x27   : > { %p2506_p3 = pneg %p2505_p0 }
  0x29   : > { %p2511_p7 = pnand %p2509_p5, %p2506_p3 }
  0x2b   : > { %2514 = shalt.err (!%p2511_p7)
}
  0x2c   : > { %s2515_s27 = scalar_lea.vmem %s2860_s21, 1024  ;;  %p2523_p2 = scmp.lt.s32.totalorder %s2860_s21, %s2860_s21 }
  0x2d   : > { %p2516_p9 = scmp.ne.s32.totalorder %s2860_s21, %s2515_s27  ;;  %p2524_p6 = scmp.lt.s32.totalorder %s2515_s27, %s2515_s27 }
  0x2f   : > { %p2518_p10 = pnand %p2516_p9, %p2883_p13  ;;  %p2525_p12 = por %p2524_p6, %p2523_p2 }
  0x31   : > { %p2519_p1 = pneg %p2518_p10 }
  0x33   : > { %p2526_p0 = pnand %p2525_p12, %p2519_p1 }
  0x35   : > { %2529 = shalt.err (!%p2526_p0)
}
  0x36   : > { %s3497_s28 = smov 64   ;;  %s3498_s29 = smov 4  }
  0x37   : > { %2353 = dma.hbm_to_vmem [thread:$0]  (!%p2867_p11), %s3513_s2, 1024, %s2860_s21, [#allocation6], %s3497_s28, %s3497_s28, %s3498_s29  }
  0x38   : > { %s3515_s6 = sld [smem:[#allocation22_spill]] }
  0x3e   : > { %s2530_s27 = scalar_lea.hbm %s3515_s6, 1024 }
  0x3f   : > { %p2531_p1 = scmp.ne.s32.totalorder %s3515_s6, %s2530_s27  ;;  %p2537_p10 = scmp.lt.u32.totalorder %s2530_s27, %s3515_s6 }
  0x41   : > { %p2533_p2 = pnand %p2531_p1, %p2883_p13 }
  0x43   : > { %p2534_p6 = pneg %p2533_p2 }
  0x45   : > { %p2539_p3 = pnand %p2537_p10, %p2534_p6 }
  0x47   : > { %2542 = shalt.err (!%p2539_p3)
}
  0x48   : > { %s2543_s21 = scalar_lea.vmem %s2871_s24, 1024  ;;  %p2551_p12 = scmp.lt.s32.totalorder %s2871_s24, %s2871_s24 }
  0x49   : > { %p2544_p5 = scmp.ne.s32.totalorder %s2871_s24, %s2543_s21  ;;  %p2552_p0 = scmp.lt.s32.totalorder %s2543_s21, %s2543_s21 }
  0x4b   : > { %p2546_p7 = pnand %p2544_p5, %p2883_p13  ;;  %p2553_p1 = por %p2552_p0, %p2551_p12 }
  0x4d   : > { %p2547_p9 = pneg %p2546_p7 }
  0x4f   : > { %p2554_p2 = pnand %p2553_p1, %p2547_p9 }
  0x51   : > { %2557 = shalt.err (!%p2554_p2)
}
  0x52   : > { %2356 = dma.hbm_to_vmem [thread:$0]  (!%p2867_p11), %s3515_s6, 1024, %s2871_s24, [#allocation9], %s3497_s28, %s3497_s28, %s3498_s29  }
  0x53   : > { %s3516_s7 = sld [smem:[#allocation23_spill]] }
  0x59   : > { %s2558_s16 = scalar_lea.hbm %s3516_s7, 1024 }
  0x5a   : > { %p2559_p6 = scmp.ne.s32.totalorder %s3516_s7, %s2558_s16  ;;  %p2565_p5 = scmp.lt.u32.totalorder %s2558_s16, %s3516_s7 }
  0x5c   : > { %p2561_p10 = pnand %p2559_p6, %p2883_p13 }
  0x5e   : > { %p2562_p3 = pneg %p2561_p10 }
  0x60   : > { %p2567_p7 = pnand %p2565_p5, %p2562_p3 }
  0x62   : > { %2570 = shalt.err (!%p2567_p7)
}
  0x63   : > { %s2571_s21 = scalar_lea.vmem %s323_s26, 1024  ;;  %p2579_p1 = scmp.lt.s32.totalorder %s323_s26, %s323_s26 }
  0x64   : > { %p2572_p9 = scmp.ne.s32.totalorder %s323_s26, %s2571_s21  ;;  %p2580_p2 = scmp.lt.s32.totalorder %s2571_s21, %s2571_s21 }
  0x66   : > { %p2574_p12 = pnand %p2572_p9, %p2883_p13  ;;  %p2581_p4 = por %p2580_p2, %p2579_p1 }
  0x68   : > { %p2575_p0 = pneg %p2574_p12 }
  0x6a   : > { %p2582_p8 = pnand %p2581_p4, %p2575_p0 }
  0x6c   : > { %2585 = shalt.err (!%p2582_p8)
}
  0x6d   : > { %2359 = dma.hbm_to_vmem [thread:$0]  (!%p2867_p11), %s3516_s7, 1024, %s323_s26, [#allocation9], %s3497_s28, %s3497_s28, %s3498_s29  }
  0x6e   : > { %s50_s18 = sadd.s32 1, %s2728_s11  ;;  %s41_s22 = sadd.s32 1, %s2736_s13 }
  0x6f   : > { %p57_p4 = scmp.ne.s32.totalorder %s2728_s11, %s2724_s10  ;;  %p43_p8 = scmp.ge.s32.totalorder %s41_s22, 2 }
  0x70   : > { %p58_p13 = scmp.eq.s32.totalorder %s2740_s14, 0  ;;  %p3517_p6 = scmp.eq.s32.totalorder %s2837_s15, 1 }
  0x71   : > { %p2374_p3 = scmp.lt.s32.totalorder %s2740_s14, 2  ;;  %s3544_s22 = smov (%p43_p8, %s41_s22), 0 }
  0x72   : > { %p2962_p10 = por %p3517_p6, %p57_p4  ;;  %p59_p5 = por %p58_p13, %p57_p4 }
  0x73   : > { %s2970_s30 = sand.u32 1, %s2728_s11   ;;  %s47_s26 = ssub.s32 %s2736_s13, %s3544_s22 }
  0x74   : > { %s3518_s9 = scalar_select %p2962_p10, 1, 0 }
  0x75   : > { %p48_p11 = scmp.eq.s32.totalorder %s47_s26, 0  ;;  %s1767_s12 = sshll.u32 %s2970_s30, 6 }
  0x76   : > { %s1834_s16 = sshll.u32 %s2736_s13, 10  ;;  %s3519_s0 = sld [smem:[#allocation20_spill]] }
  0x77   : > { %s2977_s20 = scalar_select %p48_p11, %s2728_s11, %s50_s18  }
  0x78   : > { %s343_s21 = scalar_lea.vmem [#allocation2], %s1767_s12  ;;  %p2988_p7 = pnand %p2374_p3, %p59_p5 }
  0x79   : > { %s351_s24 = sshll.u32 %s343_s21, 4  ;;  %s1770_s26 = sshll.u32 %s2970_s30, 2  ;;  %s2984_s24 = int_to_ptr.vmem [resolvable:$true] %s351_s24 }
  0x7a   : > { %s340_s23 = scalar_lea.sflag [#allocation3], %s2970_s30  ;;  %p2588_p12 = pneg %p2988_p7 }
  0x7c   : > { %s2982_s27 = scalar_lea.hbm %s3519_s0, %s1834_s16  ;;  %s2591_s21 = scalar_lea.hbm %s3519_s0, 2048 }
  0x7d   : > { %s2586_s16 = scalar_lea.hbm %s2982_s27, 1024  ;;  %p2592_p2 = scmp.lt.u32.totalorder %s2982_s27, %s3519_s0 }
  0x7e   : > { %p2587_p9 = scmp.ne.s32.totalorder %s2982_s27, %s2586_s16  ;;  %p2593_p4 = scmp.lt.u32.totalorder %s2591_s21, %s2586_s16 }
  0x7f   : > { %p2595_p13 = scmp.lt.u32.totalorder %s2586_s16, %s2982_s27 }
  0x80   : > { %p2589_p0 = pnand %p2588_p12, %p2587_p9  ;;  %p2594_p8 = por %p2593_p4, %p2592_p2 }
  0x82   : > { %p2590_p1 = pneg %p2589_p0  ;;  %p2596_p6 = por %p2595_p13, %p2594_p8 }
  0x84   : > { %p2597_p3 = pnand %p2596_p6, %p2590_p1 }
  0x86   : > { %2600 = shalt.err (!%p2597_p3)
}
  0x87   : > { %s2601_s18 = scalar_lea.vmem %s2984_s24, 1024  ;;  %s2747_s12 = smov [#allocation2]  }
  0x88   : > { %p2602_p5 = scmp.ne.s32.totalorder %s2984_s24, %s2601_s18  ;;  %s2606_s25 = sshll.u32 %s2747_s12, 4  ;;  %s2607_s25 = int_to_ptr.vmem [resolvable:$false] %s2606_s25 }
  0x89   : > { %s2608_s28 = scalar_lea.vmem %s2607_s25, 2048  ;;  %p2609_p0 = scmp.lt.s32.totalorder %s2984_s24, %s2607_s25 }
  0x8a   : > { %p2604_p11 = pnand %p2602_p5, %p2588_p12  ;;  %p2610_p2 = scmp.lt.s32.totalorder %s2608_s28, %s2601_s18 }
  0x8c   : > { %p2605_p9 = pneg %p2604_p11  ;;  %p2611_p4 = por %p2610_p2, %p2609_p0 }
  0x8e   : > { %p2612_p8 = pnand %p2611_p4, %p2605_p9 }
  0x90   : > { %2615 = shalt.err (!%p2612_p8)
}
  0x91   : > { %s3521_s29 = smov 4   ;;  %s3522_s16 = smov 64  }
  0x92   : > { %2363 = dma.hbm_to_vmem [thread:$0]  (!%p2988_p7), %s2982_s27, 1024, %s2984_s24, %s340_s23, %s3522_s16, %s3522_s16, %s3521_s29  }
  0x93   : > { %s1771_s21 = sshll.u32 %s2736_s13, 6  ;;  %s365_s28 = scalar_lea.vmem [#allocation5], %s1770_s26 }
  0x94   : > { %s3029_s25 = scalar_lea.hbm %s3482_s1, %s1771_s21  ;;  %s373_s0 = sshll.u32 %s365_s28, 4  ;;  %s374_s0 = int_to_ptr.vmem [resolvable:$true] %s373_s0 }
  0x95   : > { %s3523_s2 = sand.u32 1, %s2740_s14   ;;  %s2616_s7 = scalar_lea.hbm %s3029_s25, 64 }
  0x96   : > { %s362_s6 = scalar_lea.sflag [#allocation6], %s3523_s2  ;;  %p2617_p1 = scmp.ne.s32.totalorder %s3029_s25, %s2616_s7 }
  0x97   : > { %s2621_s23 = scalar_lea.hbm %s3482_s1, 128  ;;  %p2622_p3 = scmp.lt.u32.totalorder %s3029_s25, %s3482_s1 }
  0x98   : > { %p2619_p13 = pnand %p2617_p1, %p2588_p12  ;;  %p2623_p5 = scmp.lt.u32.totalorder %s2621_s23, %s2616_s7 }
  0x99   : > { %p2625_p9 = scmp.lt.u32.totalorder %s2616_s7, %s3029_s25 }
  0x9a   : > { %p2620_p6 = pneg %p2619_p13  ;;  %p2624_p11 = por %p2623_p5, %p2622_p3 }
  0x9c   : > { %p2626_p0 = por %p2625_p9, %p2624_p11 }
  0x9e   : > { %p2627_p2 = pnand %p2626_p0, %p2620_p6 }
  0xa0   : > { %2630 = shalt.err (!%p2627_p2)
}
  0xa1   : > { %s2631_s2 = scalar_lea.vmem %s374_s0, 64  ;;  %s2748_s26 = smov [#allocation5]  }
  0xa2   : > { %p2632_p4 = scmp.ne.s32.totalorder %s374_s0, %s2631_s2  ;;  %s2636_s16 = sshll.u32 %s2748_s26, 4  ;;  %s2637_s16 = int_to_ptr.vmem [resolvable:$false] %s2636_s16 }
  0xa3   : > { %s2638_s21 = scalar_lea.vmem %s2637_s16, 128  ;;  %p2639_p13 = scmp.lt.s32.totalorder %s374_s0, %s2637_s16 }
  0xa4   : > { %p2634_p8 = pnand %p2632_p4, %p2588_p12  ;;  %p2640_p10 = scmp.lt.s32.totalorder %s2638_s21, %s2631_s2 }
  0xa6   : > { %p2635_p1 = pneg %p2634_p8  ;;  %p2641_p3 = por %p2640_p10, %p2639_p13 }
  0xa8   : > { %p2642_p5 = pnand %p2641_p3, %p2635_p1 }
  0xaa   : > { %2645 = shalt.err (!%p2642_p5)
}
  0xab   : > { %2366 = dma.hbm_to_vmem [thread:$0]  (!%p2988_p7), %s3029_s25, 64, %s374_s0, %s362_s6  }
  0xac   : > { %p3524_p6 = scmp.ne.s32.totalorder %s3511_s19, 0 }
  0xad   : > { %s3057_s7 = sand.u32 (!%p3524_p6), 1, %s2724_s10   ;;  %p3525_p10 = scmp.ne.s32.totalorder (!%p3524_p6), %s3508_s17, 0 }
  0xae   : > { %382 = sbr.rel (%p3524_p6) target bundleno = 1418 (0x58a), region = 56  ;;  %s1773_s12 = sshll.u32 (!%p3524_p6), %s3057_s7, 6 }
  0xaf   : > { %s385_s18 = scalar_lea.sflag (!%p3524_p6), [#allocation3], %s3057_s7  ;;  %s3061_s28 = scalar_lea.vmem (!%p3524_p6), [#allocation2], %s1773_s12 }
  0xb5   : > { %2699 = dma.done.wait (%p3525_p10), %s385_s18, 1024  }
  0xb6   : > { %2701 = vsyncadd (%p3525_p10), %s385_s18, 4294966272  ;;  %s393_s0 = sand.u32 1, %s2837_s15   ;;  %s1774_s6 = sshll.u32 %s3057_s7, 2 }
  0xb7   : > { %s394_s19 = scalar_lea.sflag [#allocation6], %s393_s0  ;;  %s3069_s8 = scalar_lea.vmem [#allocation5], %s1774_s6 }
  0xb8   : > { %2703 = dma.done.wait (%p3525_p10), %s394_s19, 64  }
  0xb9   : > { %2705 = vsyncadd (%p3525_p10), %s394_s19, 4294967232  ;;  %p3526_p7 = scmp.eq.s32.totalorder %s2837_s15, 0 }
  0xbb   : > { %2707 = dma.done.wait (%p3526_p7), [#allocation6], 1024   ;;  %p3527_p12 = pmov %p3526_p7 }
  0xbc   : > { %p3528_p11 = pmov %p3526_p7 }
  0xbd   : > { %2709 = vsyncadd (%p3527_p12), [#allocation6], 4294966272 }
  0xbe   : > { %2711 = dma.done.wait (%p3528_p11), [#allocation9], 2048   ;;  %p3529_p9 = pmov %p3526_p7 }
  0xbf   : > { %v2438_v0 = vld [vmem:[#allocation7] sm:$0xff]   ;;  %v2439_v1 = vld [vmem:[#allocation7 + $0x8] sm:$0xff]   ;;  %v2440_v2 = vld [vmem:[#allocation7 + $0x10] sm:$0xff]   ;;  %vm2750_vm0 = vmmov 0   ;;  %s1778_s30 = sshll.u32 %s3057_s7, 3  ;;  %s3530_s16 = sld [smem:[#allocation24_spill]] }
  0xc0   : > { %2713 = vsyncadd (%p3529_p9), [#allocation9], 4294965248  ;;  %1968 = vmatprep.subr.bf16.mxu0 %v2438_v0  ;;  %v2441_v3 = vld [vmem:[#allocation7 + $0x18] sm:$0xff]   ;;  %v2442_v5 = vld [vmem:[#allocation7 + $0x20] sm:$0xff]   ;;  %s3311_s29 = scalar_lea.vmem [#allocation11], %s1778_s30  ;;  %s3531_s21 = sld [smem:[#allocation18_spill]] }
  0xc1   : > { %1969 = vmatpush3.bf16.msra.mxu0 %v2438_v0  ;;  %v2446_v4 = vld [vmem:[%s3061_s28] sm:$0xff]   ;;  %v2443_v6 = vld [vmem:[#allocation7 + $0x28] sm:$0xff]   ;;  %v2454_v7 = vld [vmem:[#allocation8] sm:$0xff]   ;;  %s1626_s18 = sshll.u32 %s3311_s29, 4  ;;  %s3532_s6 = sld [smem:[#allocation25_spill]]  ;;  %s3430_s18 = int_to_ptr.vmem [resolvable:$true] %s1626_s18 }
  0xc2   : > { %1970 = vmatprep.subr.bf16.mxu0 %v2439_v1  ;;  %1984 = vmatprep.mubr.bf16.mxu0 %v2446_v4  ;;  %v2455_v8 = vld [vmem:[#allocation8 + $0x8] sm:$0xff]   ;;  %v2444_v9 = vld [vmem:[#allocation7 + $0x30] sm:$0xff]   ;;  %v2445_v11 = vld [vmem:[#allocation7 + $0x38] sm:$0xff]   ;;  %s2646_s15 = scalar_lea.vmem %s3430_s18, 128  ;;  %p3533_p2 = scmp.ne.s32.totalorder %s3518_s9, 0 }
  0xc3   : > { %2000 = vmatprep.subr.bf16.mxu1 %v2454_v7  ;;  %v2456_v10 = vld [vmem:[#allocation8 + $0x10] sm:$0xff]   ;;  %v2457_v12 = vld [vmem:[#allocation8 + $0x18] sm:$0xff]   ;;  %v2458_v13 = vld [vmem:[#allocation8 + $0x20] sm:$0xff]   ;;  %p2647_p0 = scmp.ne.s32.totalorder %s3430_s18, %s2646_s15  ;;  %s2753_s17 = smov [#allocation11]  }
  0xc4   : > { %2001 = vmatpush3.bf16.msra.mxu1 %v2454_v7  ;;  %v2447_v14 = vld [vmem:[%s3061_s28 + $0x8] sm:$0xff]   ;;  %v2448_v15 = vld [vmem:[%s3061_s28 + $0x10] sm:$0xff]   ;;  %v2449_v17 = vld [vmem:[%s3061_s28 + $0x18] sm:$0xff]   ;;  %s2650_s25 = sshll.u32 %s2753_s17, 4  ;;  %s2651_s25 = int_to_ptr.vmem [resolvable:$false] %s2650_s25 }
  0xc5   : > { %1971 = vmatpush3.bf16.msra.mxu0 %v2439_v1  ;;  %2002 = vmatprep.subr.bf16.mxu1 %v2455_v8  ;;  %v2459_v16 = vld [vmem:[#allocation8 + $0x28] sm:$0xff]   ;;  %v2450_v18 = vld [vmem:[%s3061_s28 + $0x20] sm:$0xff]   ;;  %v2451_v19 = vld [vmem:[%s3061_s28 + $0x28] sm:$0xff]   ;;  %p2648_p4 = pnand %p2647_p0, %p3533_p2  ;;  %s2652_s27 = scalar_lea.vmem %s2651_s25, 256 }
  0xc6   : > { %1972 = vmatprep.subr.bf16.mxu0 %v2440_v2  ;;  %v2452_v20 = vld [vmem:[%s3061_s28 + $0x30] sm:$0xff]   ;;  %v2453_v21 = vld [vmem:[%s3061_s28 + $0x38] sm:$0xff]   ;;  %v2461_v23 = vld [vmem:[#allocation8 + $0x38] sm:$0xff]   ;;  %s1835_s12 = sshll.u32 %s3531_s21, 7  ;;  %p2653_p1 = scmp.lt.s32.totalorder %s3430_s18, %s2651_s25 }
  0xc7   : > { %v2460_v22 = vld [vmem:[#allocation8 + $0x30] sm:$0xff]   ;;  %v1779_v24 = vld [vmem:[%s3484_s3] ss:$0 sm:$0xff]  ;;  %s3428_s19 = scalar_lea.hbm %s3532_s6, %s1835_s12  ;;  %p2649_p8 = pneg %p2648_p4 }
  0xc8   : > { %2003 = vmatpush3.bf16.msra.mxu1 %v2455_v8  ;;  %p2654_p13 = scmp.lt.s32.totalorder %s2652_s27, %s2646_s15 }
  0xc9   : > { %1973 = vmatpush3.bf16.msra.mxu0 %v2440_v2  ;;  %2004 = vmatprep.subr.bf16.mxu1 %v2456_v10 }
  0xca   : > { %1974 = vmatprep.subr.bf16.mxu0 %v2441_v3  ;;  %p2655_p3 = por %p2654_p13, %p2653_p1 }
  0xcc   : > { %2005 = vmatpush3.bf16.msra.mxu1 %v2456_v10  ;;  %p2656_p5 = pnand %p2655_p3, %p2649_p8 }
  0xcd   : > { %1975 = vmatpush3.bf16.msra.mxu0 %v2441_v3  ;;  %2006 = vmatprep.subr.bf16.mxu1 %v2457_v12 }
  0xce   : > { %1976 = vmatprep.subr.bf16.mxu0 %v2442_v5 }
  0xd0   : > { %2007 = vmatpush3.bf16.msra.mxu1 %v2457_v12 }
  0xd1   : > { %1977 = vmatpush3.bf16.msra.mxu0 %v2442_v5  ;;  %2008 = vmatprep.subr.bf16.mxu1 %v2458_v13 }
  0xd2   : > { %1978 = vmatprep.subr.bf16.mxu0 %v2443_v6 }
  0xd4   : > { %2009 = vmatpush3.bf16.msra.mxu1 %v2458_v13 }
  0xd5   : > { %1979 = vmatpush3.bf16.msra.mxu0 %v2443_v6  ;;  %2010 = vmatprep.subr.bf16.mxu1 %v2459_v16 }
  0xd6   : > { %1980 = vmatprep.subr.bf16.mxu0 %v2444_v9 }
  0xd8   : > { %2011 = vmatpush3.bf16.msra.mxu1 %v2459_v16 }
  0xd9   : > { %1981 = vmatpush3.bf16.msra.mxu0 %v2444_v9  ;;  %2012 = vmatprep.subr.bf16.mxu1 %v2460_v22 }
  0xda   : > { %1982 = vmatprep.subr.bf16.mxu0 %v2445_v11 }
  0xdc   : > { %2013 = vmatpush3.bf16.msra.mxu1 %v2460_v22 }
  0xdd   : > { %1983 = vmatpush3.bf16.msra.mxu0 %v2445_v11  ;;  %2014 = vmatprep.subr.bf16.mxu1 %v2461_v23 }
  0xde   : > { %2032 = vmatprep.subr.bf16.mxu0 %v2454_v7 }
  0xe0   : > { %1985 = vmatmul.mubr.bf16.vlgmr.msra.gmra.mrb[0].mxu0 %v2447_v14  ;;  %2015 = vmatpush3.bf16.msra.mxu1 %v2461_v23 }
  0xe1   : > { %1988 = vmatprep.mubr.bf16.mxu0 %v2448_v15  ;;  %2033 = vmatpush3.bf16.msra.mxu0 %v2454_v7 }
  0xe2   : > { %2034 = vmatprep.subr.bf16.mxu0 %v2455_v8 }
  0xe5   : > { %2035 = vmatpush3.bf16.msra.mxu0 %v2455_v8 }
  0xe6   : > { %2036 = vmatprep.subr.bf16.mxu0 %v2456_v10 }
  0xe8   : > { %1989 = vmatmul.mubr.bf16.gmra.mrb[4].mxu0 %v2449_v17  ;;  %v2462_v17 = vld [vmem:[#allocation10] sm:$0xff]  }
  0xe9   : > { %1992 = vmatprep.mubr.bf16.mxu0 %v2450_v18  ;;  %2037 = vmatpush3.bf16.msra.mxu0 %v2456_v10  ;;  %v2463_v18 = vld [vmem:[#allocation10 + $0x8] sm:$0xff]  }
  0xea   : > { %2038 = vmatprep.subr.bf16.mxu0 %v2457_v12  ;;  %2064 = vmatprep.subr.bf16.mxu1 %v2462_v17 }
  0xed   : > { %2039 = vmatpush3.bf16.msra.mxu0 %v2457_v12 }
  0xee   : > { %2040 = vmatprep.subr.bf16.mxu0 %v2458_v13 }
  0xf0   : > { %1993 = vmatmul.mubr.bf16.gmra.mrb[8].mxu0 %v2451_v19 }
  0xf1   : > { %1996 = vmatprep.mubr.bf16.mxu0 %v2452_v20  ;;  %2041 = vmatpush3.bf16.msra.mxu0 %v2458_v13 }
  0xf2   : > { %2042 = vmatprep.subr.bf16.mxu0 %v2459_v16 }
  0xf5   : > { %2043 = vmatpush3.bf16.msra.mxu0 %v2459_v16 }
  0xf6   : > { %2044 = vmatprep.subr.bf16.mxu0 %v2460_v22 }
  0xf8   : > { %1997 = vmatmul.mubr.bf16.gmra.mrb[12].mxu0 %v2453_v21 }
  0xf9   : > { %2045 = vmatpush3.bf16.msra.mxu0 %v2460_v22 }
  0xfa   : > { %2046 = vmatprep.subr.bf16.mxu0 %v2461_v23 }
  0xfd   : > { %2047 = vmatpush3.bf16.msra.mxu0 %v2461_v23 }
 0x1b3   : > { %v1986_v25 = vpop.f32.mrb[0].mxu0 }
 0x1b4   : > { %v631_v26 = vpop.f32.mrb[1].mxu0  ;;  %v3096_v29 = vadd.f32 %v1986_v25, %v1779_v24 }
 0x1b5   : > { %v3094_v27 = vadd.f32 %v1779_v24, %v631_v26  ;;  %v1987_v28 = vpop.f32.mrb[2].mxu0 }
 0x1b6   : > { %v3098_v30 = vadd.f32 %v1987_v28, %v1779_v24  ;;  %v634_v31 = vpop.f32.mrb[3].mxu0  ;;  %v696_v36 = vmax.f32 %v3096_v29, 0.0 }
 0x1b7   : > { %v3100_v32 = vadd.f32 %v1779_v24, %v634_v31  ;;  %v694_v34 = vmax.f32 %v3094_v27, 0.0 }
 0x1b8   : > { %v697_v33 = vmax.f32 %v3098_v30, 0.0 }
 0x1b9   : > { %v695_v35 = vmax.f32 %v3100_v32, 0.0 }
 0x1ba   : > { %v711_v39 = vpack.c.bf16 %v697_v33, %v696_v36 }
 0x1bb   : > { %v1990_v37 = vpop.f32.mrb[4].mxu0  ;;  %v710_v38 = vpack.c.bf16 %v695_v35, %v694_v34 }
 0x1bc   : > { %v647_v40 = vpop.f32.mrb[5].mxu0  ;;  %v3116_v43 = vadd.f32 %v1990_v37, %v1779_v24 }
 0x1bd   : > { %v3114_v41 = vadd.f32 %v1779_v24, %v647_v40  ;;  %v1991_v42 = vpop.f32.mrb[6].mxu0  ;;  %2016 = vmatprep.mubr.bf16.mxu1 %v710_v38 }
 0x1be   : > { %v3118_v44 = vadd.f32 %v1991_v42, %v1779_v24  ;;  %v650_v45 = vpop.f32.mrb[7].mxu0  ;;  %2017 = vmatmul.mubr.bf16.vlgmr.msra.gmra.mrb[0].mxu1 %v711_v39  ;;  %v700_v50 = vmax.f32 %v3116_v43, 0.0 }
 0x1bf   : > { %v3120_v46 = vadd.f32 %v1779_v24, %v650_v45  ;;  %v698_v48 = vmax.f32 %v3114_v41, 0.0  ;;  %2065 = vmatpush3.bf16.msra.mxu1 %v2462_v17 }
 0x1c0   : > { %v701_v47 = vmax.f32 %v3118_v44, 0.0  ;;  %2066 = vmatprep.subr.bf16.mxu1 %v2463_v18 }
 0x1c1   : > { %v699_v49 = vmax.f32 %v3120_v46, 0.0 }
 0x1c2   : > { %v713_v53 = vpack.c.bf16 %v701_v47, %v700_v50 }
 0x1c3   : > { %v712_v51 = vpack.c.bf16 %v699_v49, %v698_v48  ;;  %v1994_v52 = vpop.f32.mrb[8].mxu0  ;;  %2067 = vmatpush3.bf16.msra.mxu1 %v2463_v18 }
 0x1c4   : > { %v663_v54 = vpop.f32.mrb[9].mxu0  ;;  %v3132_v57 = vadd.f32 %v1994_v52, %v1779_v24 }
 0x1c5   : > { %v3130_v55 = vadd.f32 %v1779_v24, %v663_v54  ;;  %v1995_v56 = vpop.f32.mrb[10].mxu0  ;;  %2020 = vmatprep.mubr.bf16.mxu1 %v712_v51 }
 0x1c6   : > { %v3134_v58 = vadd.f32 %v1995_v56, %v1779_v24  ;;  %v666_v59 = vpop.f32.mrb[11].mxu0  ;;  %2021 = vmatmul.mubr.bf16.gmra.mrb[4].mxu1 %v713_v53  ;;  %v704_v0 = vmax.f32 %v3132_v57, 0.0 }
 0x1c7   : > { %v3136_v60 = vadd.f32 %v1779_v24, %v666_v59  ;;  %v702_v62 = vmax.f32 %v3130_v55, 0.0 }
 0x1c8   : > { %v705_v61 = vmax.f32 %v3134_v58, 0.0 }
 0x1c9   : > { %v703_v63 = vmax.f32 %v3136_v60, 0.0 }
 0x1ca   : > { %v715_v3 = vpack.c.bf16 %v705_v61, %v704_v0 }
 0x1cb   : > { %v714_v1 = vpack.c.bf16 %v703_v63, %v702_v62  ;;  %v1998_v2 = vpop.f32.mrb[12].mxu0 }
 0x1cc   : > { %v679_v4 = vpop.f32.mrb[13].mxu0  ;;  %v3148_v7 = vadd.f32 %v1998_v2, %v1779_v24 }
 0x1cd   : > { %v3146_v5 = vadd.f32 %v1779_v24, %v679_v4  ;;  %v1999_v6 = vpop.f32.mrb[14].mxu0  ;;  %2024 = vmatprep.mubr.bf16.mxu1 %v714_v1 }
 0x1ce   : > { %v3150_v8 = vadd.f32 %v1999_v6, %v1779_v24  ;;  %v682_v9 = vpop.f32.mrb[15].mxu0  ;;  %2025 = vmatmul.mubr.bf16.gmra.mrb[8].mxu1 %v715_v3  ;;  %v708_v14 = vmax.f32 %v3148_v7, 0.0 }
 0x1cf   : > { %v3152_v10 = vadd.f32 %v1779_v24, %v682_v9  ;;  %v706_v12 = vmax.f32 %v3146_v5, 0.0 }
 0x1d0   : > { %v709_v11 = vmax.f32 %v3150_v8, 0.0 }
 0x1d1   : > { %v707_v13 = vmax.f32 %v3152_v10, 0.0  ;;  %v2465_v10 = vld [vmem:[#allocation10 + $0x18] sm:$0xff]  }
 0x1d2   : > { %v717_v16 = vpack.c.bf16 %v709_v11, %v708_v14 }
 0x1d3   : > { %v716_v15 = vpack.c.bf16 %v707_v13, %v706_v12 }
 0x1d5   : > { %2028 = vmatprep.mubr.bf16.mxu1 %v716_v15  ;;  %v2468_v15 = vld [vmem:[#allocation10 + $0x30] sm:$0xff]  }
 0x1d6   : > { %2029 = vmatmul.mubr.bf16.gmra.mrb[12].mxu1 %v717_v16  ;;  %v2469_v16 = vld [vmem:[#allocation10 + $0x38] sm:$0xff]  }
 0x291   : > { %v2018_v19 = vpop.f32.mrb[0].mxu1 }
 0x292   : > { %v816_v20 = vpop.f32.mrb[1].mxu1  ;;  %v3168_v23 = vsub.f32 %v696_v36, %v2018_v19 }
 0x293   : > { %v3164_v21 = vsub.f32 %v694_v34, %v816_v20  ;;  %v2019_v22 = vpop.f32.mrb[2].mxu1 }
 0x294   : > { %v3172_v24 = vsub.f32 %v697_v33, %v2019_v22  ;;  %v819_v25 = vpop.f32.mrb[3].mxu1  ;;  %v897_v31 = vmul.f32 %v3168_v23, %v3168_v23 }
 0x295   : > { %v3176_v26 = vsub.f32 %v695_v35, %v819_v25  ;;  %v895_v27 = vmul.f32 %v3164_v21, %v3164_v21 }
 0x296   : > { %v898_v28 = vmul.f32 %v3172_v24, %v3172_v24 }
 0x297   : > { %v896_v29 = vmul.f32 %v3176_v26, %v3176_v26 }
 0x298   : > { %v912_v34 = vpack.c.bf16 %v898_v28, %v897_v31 }
 0x299   : > { %v2022_v30 = vpop.f32.mrb[4].mxu1  ;;  %v911_v33 = vpack.c.bf16 %v896_v29, %v895_v27 }
 0x29a   : > { %v832_v36 = vpop.f32.mrb[5].mxu1  ;;  %v3188_v35 = vsub.f32 %v700_v50, %v2022_v30 }
 0x29b   : > { %v3186_v37 = vsub.f32 %v698_v48, %v832_v36  ;;  %v2023_v32 = vpop.f32.mrb[6].mxu1  ;;  %2048 = vmatprep.mubr.bf16.mxu0 %v911_v33 }
 0x29c   : > { %v3192_v38 = vsub.f32 %v701_v47, %v2023_v32  ;;  %v835_v39 = vpop.f32.mrb[7].mxu1  ;;  %2049 = vmatmul.mubr.bf16.vlgmr.msra.gmra.mrb[16].mxu0 %v912_v34  ;;  %v901_v44 = vmul.f32 %v3188_v35, %v3188_v35 }
 0x29d   : > { %v3196_v40 = vsub.f32 %v699_v49, %v835_v39  ;;  %v899_v42 = vmul.f32 %v3186_v37, %v3186_v37 }
 0x29e   : > { %v902_v41 = vmul.f32 %v3192_v38, %v3192_v38 }
 0x29f   : > { %v900_v43 = vmul.f32 %v3196_v40, %v3196_v40 }
 0x2a0   : > { %v914_v50 = vpack.c.bf16 %v902_v41, %v901_v44 }
 0x2a1   : > { %v2026_v45 = vpop.f32.mrb[8].mxu1  ;;  %v913_v47 = vpack.c.bf16 %v900_v43, %v899_v42  ;;  %v3249_v42 = vld [vmem:[%s3485_s4] ss:$0 sm:$0xff] }
 0x2a2   : > { %v848_v48 = vpop.f32.mrb[9].mxu1  ;;  %v3208_v49 = vsub.f32 %v704_v0, %v2026_v45 }
 0x2a3   : > { %v3206_v51 = vsub.f32 %v702_v62, %v848_v48  ;;  %v2027_v46 = vpop.f32.mrb[10].mxu1  ;;  %2052 = vmatprep.mubr.bf16.mxu0 %v913_v47 }
 0x2a4   : > { %v3212_v52 = vsub.f32 %v705_v61, %v2027_v46  ;;  %v851_v53 = vpop.f32.mrb[11].mxu1  ;;  %2053 = vmatmul.mubr.bf16.gmra.mrb[20].mxu0 %v914_v50  ;;  %v905_v58 = vmul.f32 %v3208_v49, %v3208_v49 }
 0x2a5   : > { %v3216_v54 = vsub.f32 %v703_v63, %v851_v53  ;;  %v903_v56 = vmul.f32 %v3206_v51, %v3206_v51 }
 0x2a6   : > { %v906_v55 = vmul.f32 %v3212_v52, %v3212_v52 }
 0x2a7   : > { %v904_v57 = vmul.f32 %v3216_v54, %v3216_v54 }
 0x2a8   : > { %v916_v0 = vpack.c.bf16 %v906_v55, %v905_v58 }
 0x2a9   : > { %v2030_v59 = vpop.f32.mrb[12].mxu1  ;;  %v915_v61 = vpack.c.bf16 %v904_v57, %v903_v56 }
 0x2aa   : > { %v864_v62 = vpop.f32.mrb[13].mxu1  ;;  %v3228_v63 = vsub.f32 %v708_v14, %v2030_v59  ;;  %v2467_v14 = vld [vmem:[#allocation10 + $0x28] sm:$0xff]  }
 0x2ab   : > { %v3226_v1 = vsub.f32 %v706_v12, %v864_v62  ;;  %v2031_v60 = vpop.f32.mrb[14].mxu1  ;;  %2056 = vmatprep.mubr.bf16.mxu0 %v915_v61  ;;  %v2464_v12 = vld [vmem:[#allocation10 + $0x10] sm:$0xff]  }
 0x2ac   : > { %v3232_v2 = vsub.f32 %v709_v11, %v2031_v60  ;;  %v867_v3 = vpop.f32.mrb[15].mxu1  ;;  %2057 = vmatmul.mubr.bf16.gmra.mrb[24].mxu0 %v916_v0  ;;  %v909_v8 = vmul.f32 %v3228_v63, %v3228_v63  ;;  %2068 = vmatprep.subr.bf16.mxu1 %v2464_v12 }
 0x2ad   : > { %v3236_v4 = vsub.f32 %v707_v13, %v867_v3  ;;  %v907_v6 = vmul.f32 %v3226_v1, %v3226_v1  ;;  %2069 = vmatpush3.bf16.msra.mxu1 %v2464_v12  ;;  %v2466_v13 = vld [vmem:[#allocation10 + $0x20] sm:$0xff]  }
 0x2ae   : > { %v910_v5 = vmul.f32 %v3232_v2, %v3232_v2  ;;  %2070 = vmatprep.subr.bf16.mxu1 %v2465_v10 }
 0x2af   : > { %v908_v7 = vmul.f32 %v3236_v4, %v3236_v4 }
 0x2b0   : > { %v918_v11 = vpack.c.bf16 %v910_v5, %v909_v8 }
 0x2b1   : > { %v917_v9 = vpack.c.bf16 %v908_v7, %v907_v6  ;;  %2071 = vmatpush3.bf16.msra.mxu1 %v2465_v10 }
 0x2b2   : > { %2072 = vmatprep.subr.bf16.mxu1 %v2466_v13 }
 0x2b3   : > { %2060 = vmatprep.mubr.bf16.mxu0 %v917_v9 }
 0x2b4   : > { %2061 = vmatmul.mubr.bf16.gmra.mrb[28].mxu0 %v918_v11 }
 0x2b5   : > { %2073 = vmatpush3.bf16.msra.mxu1 %v2466_v13 }
 0x2b6   : > { %2074 = vmatprep.subr.bf16.mxu1 %v2467_v14 }
 0x2b9   : > { %2075 = vmatpush3.bf16.msra.mxu1 %v2467_v14 }
 0x2ba   : > { %2076 = vmatprep.subr.bf16.mxu1 %v2468_v15 }
 0x2bd   : > { %2077 = vmatpush3.bf16.msra.mxu1 %v2468_v15 }
 0x2be   : > { %2078 = vmatprep.subr.bf16.mxu1 %v2469_v16 }
 0x2c1   : > { %2079 = vmatpush3.bf16.msra.mxu1 %v2469_v16 }
 0x36f   : > { %v2050_v17 = vpop.f32.mrb[16].mxu0 }
 0x370   : > { %v962_v18 = vadd.f32 1e-05, %v2050_v17  ;;  %v953_v19 = vpop.f32.mrb[17].mxu0 }
 0x371   : > { %v954_v20 = vadd.f32 1e-05, %v953_v19  ;;  %v2051_v22 = vpop.f32.mrb[18].mxu0 }
 0x372   : > { %2470 = vrsqrt.f32 %v962_v18  ;;  %v965_v25 = vadd.f32 1e-05, %v2051_v22  ;;  %v956_v28 = vpop.f32.mrb[19].mxu0 }
 0x373   : > { %2472 = vrsqrt.f32 %v954_v20  ;;  %v957_v27 = vadd.f32 1e-05, %v956_v28 }
 0x374   : > { %2474 = vrsqrt.f32 %v965_v25 }
 0x375   : > { %2476 = vrsqrt.f32 %v957_v27 }
 0x377   : > { %v2054_v29 = vpop.f32.mrb[20].mxu0 }
 0x378   : > { %v978_v31 = vadd.f32 1e-05, %v2054_v29  ;;  %v969_v30 = vpop.f32.mrb[21].mxu0 }
 0x379   : > { %v970_v33 = vadd.f32 1e-05, %v969_v30  ;;  %v2055_v34 = vpop.f32.mrb[22].mxu0 }
 0x37a   : > { %2478 = vrsqrt.f32 %v978_v31  ;;  %v981_v36 = vadd.f32 1e-05, %v2055_v34  ;;  %v972_v32 = vpop.f32.mrb[23].mxu0 }
 0x37b   : > { %2480 = vrsqrt.f32 %v970_v33  ;;  %v973_v39 = vadd.f32 1e-05, %v972_v32 }
 0x37c   : > { %v2471_v41 = vpop.eup %2470  ;;  %2482 = vrsqrt.f32 %v981_v36 }
 0x37d   : > { %v2473_v43 = vpop.eup %2472  ;;  %v1034_v44 = vmul.f32 %v2471_v41, %v3168_v23  ;;  %2484 = vrsqrt.f32 %v973_v39  ;;  %v3260_v23 = vld [vmem:[%s3486_s5] ss:$0 sm:$0xff] }
 0x37e   : > { %v2475_v45 = vpop.eup %2474  ;;  %v1032_v47 = vmul.f32 %v2473_v43, %v3164_v21 }
 0x37f   : > { %v2477_v48 = vpop.eup %2476  ;;  %v1057_v50 = vmul.f32 %v3249_v42, %v1034_v44  ;;  %v1035_v46 = vmul.f32 %v2475_v45, %v3172_v24  ;;  %v2058_v53 = vpop.f32.mrb[24].mxu0 }
 0x380   : > { %v994_v55 = vadd.f32 1e-05, %v2058_v53  ;;  %v985_v56 = vpop.f32.mrb[25].mxu0  ;;  %v1033_v57 = vmul.f32 %v2477_v48, %v3176_v26  ;;  %v1055_v58 = vmul.f32 %v3249_v42, %v1032_v47 }
 0x381   : > { %v1058_v59 = vmul.f32 %v3249_v42, %v1035_v46  ;;  %v986_v21 = vadd.f32 1e-05, %v985_v56  ;;  %v2059_v61 = vpop.f32.mrb[26].mxu0  ;;  %v1080_v26 = vadd.f32 %v3260_v23, %v1057_v50 }
 0x382   : > { %2486 = vrsqrt.f32 %v994_v55  ;;  %v997_v62 = vadd.f32 1e-05, %v2059_v61  ;;  %v988_v0 = vpop.f32.mrb[27].mxu0  ;;  %v1056_v24 = vmul.f32 %v3249_v42, %v1033_v57  ;;  %v1078_v6 = vadd.f32 %v3260_v23, %v1055_v58 }
 0x383   : > { %2488 = vrsqrt.f32 %v986_v21  ;;  %v989_v60 = vadd.f32 1e-05, %v988_v0  ;;  %v1081_v3 = vadd.f32 %v3260_v23, %v1058_v59 }
 0x384   : > { %v2479_v5 = vpop.eup %2478  ;;  %2490 = vrsqrt.f32 %v997_v62  ;;  %v1079_v7 = vadd.f32 %v3260_v23, %v1056_v24 }
 0x385   : > { %v2481_v8 = vpop.eup %2480  ;;  %2492 = vrsqrt.f32 %v989_v60  ;;  %v1095_v9 = vpack.c.bf16 %v1081_v3, %v1080_v26  ;;  %v1038_v11 = vmul.f32 %v2479_v5, %v3188_v35 }
 0x386   : > { %v2483_v12 = vpop.eup %2482  ;;  %v1094_v10 = vpack.c.bf16 %v1079_v7, %v1078_v6  ;;  %v1036_v13 = vmul.f32 %v2481_v8, %v3186_v37 }
 0x387   : > { %v2485_v14 = vpop.eup %2484  ;;  %v2062_v15 = vpop.f32.mrb[28].mxu0  ;;  %v1039_v16 = vmul.f32 %v2483_v12, %v3192_v38  ;;  %v1061_v17 = vmul.f32 %v3249_v42, %v1038_v11 }
 0x388   : > { %v1010_v18 = vadd.f32 1e-05, %v2062_v15  ;;  %v1001_v19 = vpop.f32.mrb[29].mxu0  ;;  %2080 = vmatprep.mubr.bf16.mxu1 %v1094_v10  ;;  %v1037_v20 = vmul.f32 %v2485_v14, %v3196_v40  ;;  %v1059_v22 = vmul.f32 %v3249_v42, %v1036_v13 }
 0x389   : > { %v1002_v25 = vadd.f32 1e-05, %v1001_v19  ;;  %v2063_v28 = vpop.f32.mrb[30].mxu0  ;;  %2081 = vmatmul.mubr.bf16.vlgmr.msra.gmra.mrb[16].mxu1 %v1095_v9  ;;  %v1062_v35 = vmul.f32 %v3249_v42, %v1039_v16  ;;  %v1084_v31 = vadd.f32 %v3260_v23, %v1061_v17 }
 0x38a   : > { %2494 = vrsqrt.f32 %v1010_v18  ;;  %v1013_v37 = vadd.f32 1e-05, %v2063_v28  ;;  %v1004_v27 = vpop.f32.mrb[31].mxu0  ;;  %v1060_v29 = vmul.f32 %v3249_v42, %v1037_v20  ;;  %v1082_v40 = vadd.f32 %v3260_v23, %v1059_v22 }
 0x38b   : > { %2496 = vrsqrt.f32 %v1002_v25  ;;  %v1005_v38 = vadd.f32 1e-05, %v1004_v27  ;;  %v1085_v30 = vadd.f32 %v3260_v23, %v1062_v35 }
 0x38c   : > { %v2487_v33 = vpop.eup %2486  ;;  %2498 = vrsqrt.f32 %v1013_v37  ;;  %v1083_v34 = vadd.f32 %v3260_v23, %v1060_v29 }
 0x38d   : > { %v2489_v36 = vpop.eup %2488  ;;  %2500 = vrsqrt.f32 %v1005_v38  ;;  %v1097_v32 = vpack.c.bf16 %v1085_v30, %v1084_v31  ;;  %v1042_v39 = vmul.f32 %v2487_v33, %v3208_v49 }
 0x38e   : > { %v2491_v41 = vpop.eup %2490  ;;  %v1096_v43 = vpack.c.bf16 %v1083_v34, %v1082_v40  ;;  %v1040_v44 = vmul.f32 %v2489_v36, %v3206_v51 }
 0x38f   : > { %v2493_v45 = vpop.eup %2492  ;;  %v1043_v47 = vmul.f32 %v2491_v41, %v3212_v52  ;;  %v1065_v48 = vmul.f32 %v3249_v42, %v1042_v39 }
 0x390   : > { %2084 = vmatprep.mubr.bf16.mxu1 %v1096_v43  ;;  %v1041_v50 = vmul.f32 %v2493_v45, %v3216_v54  ;;  %v1063_v46 = vmul.f32 %v3249_v42, %v1040_v44 }
 0x391   : > { %2085 = vmatmul.mubr.bf16.gmra.mrb[20].mxu1 %v1097_v32  ;;  %v1066_v53 = vmul.f32 %v3249_v42, %v1043_v47  ;;  %v1088_v49 = vadd.f32 %v3260_v23, %v1065_v48 }
 0x392   : > { %v1064_v55 = vmul.f32 %v3249_v42, %v1041_v50  ;;  %v1086_v57 = vadd.f32 %v3260_v23, %v1063_v46 }
 0x393   : > { %v1089_v56 = vadd.f32 %v3260_v23, %v1066_v53 }
 0x394   : > { %v2495_v51 = vpop.eup %2494  ;;  %v1087_v52 = vadd.f32 %v3260_v23, %v1064_v55 }
 0x395   : > { %v2497_v58 = vpop.eup %2496  ;;  %v1099_v59 = vpack.c.bf16 %v1089_v56, %v1088_v49  ;;  %v1046_v54 = vmul.f32 %v2495_v51, %v3228_v63 }
 0x396   : > { %v2499_v21 = vpop.eup %2498  ;;  %v1098_v61 = vpack.c.bf16 %v1087_v52, %v1086_v57  ;;  %v1044_v62 = vmul.f32 %v2497_v58, %v3226_v1  ;;  %v1287_v57 = vlaneseq }
 0x397   : > { %v2501_v0 = vpop.eup %2500  ;;  %v1047_v24 = vmul.f32 %v2499_v21, %v3232_v2  ;;  %v1069_v60 = vmul.f32 %v3249_v42, %v1046_v54 }
 0x398   : > { %2088 = vmatprep.mubr.bf16.mxu1 %v1098_v61  ;;  %v1045_v26 = vmul.f32 %v2501_v0, %v3236_v4  ;;  %v1067_v3 = vmul.f32 %v3249_v42, %v1044_v62  ;;  %v2749_v4 = vmov 0.0|0.0   ;;  %v3366_v0 = vshrl.u32 %v1287_v57, 7 }
 0x399   : > { %2089 = vmatmul.mubr.bf16.gmra.mrb[24].mxu1 %v1099_v59  ;;  %v1070_v5 = vmul.f32 %v3249_v42, %v1047_v24  ;;  %v1092_v63 = vadd.f32 %v3260_v23, %v1069_v60  ;;  %2236 = vmatprep.subr.bf16.mxu0 %v2749_v4 }
 0x39a   : > { %v1068_v6 = vmul.f32 %v3249_v42, %v1045_v26  ;;  %v1090_v7 = vadd.f32 %v3260_v23, %v1067_v3  ;;  %2260 = vmatprep.subr.bf16.mxu1 %v2749_v4  ;;  %v2751_v42 = vmov 0.0  }
 0x39b   : > { %v1093_v1 = vadd.f32 %v3260_v23, %v1070_v5  ;;  %2128 = vmatprep.mubr.msk.f32.mxu0 %vm2750_vm0, %v2751_v42  ;;  %458 = vst [vmem:[%s3311_s29] sm:$0x3] %v2751_v42  ;;  %459 = vst [vmem:[%s3311_s29 + $0x2] sm:$0x3] %v2751_v42 }
 0x39c   : > { %v1091_v2 = vadd.f32 %v3260_v23, %v1068_v6  ;;  %460 = vst [vmem:[%s3311_s29 + $0x4] sm:$0x3] %v2751_v42  ;;  %461 = vst [vmem:[%s3311_s29 + $0x6] sm:$0x3] %v2751_v42  ;;  %v3324_v23 = vld [vmem:[%s3530_s16] ss:$0 sm:$0xff] }
 0x39d   : > { %v1101_v8 = vpack.c.bf16 %v1093_v1, %v1092_v63  ;;  %v1291_v1 = vsub.s32 0, %v3366_v0 }
 0x39e   : > { %v1100_v9 = vpack.c.bf16 %v1091_v2, %v1090_v7  ;;  %v1371_v7 = vsub.s32 1, %v3366_v0 }
 0x3a0   : > { %2092 = vmatprep.mubr.bf16.mxu1 %v1100_v9 }
 0x3a1   : > { %2093 = vmatmul.mubr.bf16.gmra.mrb[28].mxu1 %v1101_v8  ;;  %v1286_v8 = vld [vmem:[%s3069_s8] sm:$0xf]  ;;  %s1613_s8 = scalar_lea.sflag [#allocation4], %s3057_s7 }
 0x3a2   : > { %2163 = vmatprep.mubr.msk.f32.mxu1 %vm2750_vm0, %v2751_v42 }
 0x45c   : > { %v2082_v11 = vpop.f32.mrb[16].mxu1 }
 0x45d   : > { %v1216_v12 = vadd.f32 %v2082_v11, %v3324_v23  ;;  %v1207_v10 = vpop.f32.mrb[17].mxu1  ;;  %v1372_v11 = vrot.slane %v1286_v8, %v1371_v7 }
 0x45e   : > { %v1208_v13 = vadd.f32 %v3324_v23, %v1207_v10  ;;  %v2083_v14 = vpop.f32.mrb[18].mxu1  ;;  %v1533_v10 = vsub.s32 3, %v3366_v0 }
 0x45f   : > { %v1219_v15 = vadd.f32 %v2083_v14, %v3324_v23  ;;  %v1210_v16 = vpop.f32.mrb[19].mxu1  ;;  %v1272_v18 = vmax.f32 %v1216_v12, 0.0  ;;  %vm1373_vm2 = vcmp.eq.s32.totalorder %v1372_v11, %v3366_v0  ;;  %v2752_v12 = vmov 1.0  }
 0x460   : > { %v1211_v17 = vadd.f32 %v3324_v23, %v1210_v16  ;;  %v1270_v20 = vmax.f32 %v1208_v13, 0.0  ;;  %v1534_v14 = vrot.slane %v1286_v8, %v1533_v10  ;;  %v1818_v16 = vld [vmem:[%s3311_s29 + $0x2] sm:$0x3] }
 0x461   : > { %v1273_v19 = vmax.f32 %v1219_v15, 0.0  ;;  %v1296_v15 = vld [vmem:[%s3311_s29] sm:$0x3] }
 0x462   : > { %v1271_v22 = vmax.f32 %v1211_v17, 0.0  ;;  %vm1535_vm4 = vcmp.eq.s32.totalorder %v1534_v14, %v3366_v0 }
 0x463   : > { %v3330_v25 = vpack.c.bf16 %v1273_v19, %v1272_v18 }
 0x464   : > { %v3332_v28 = vpack.c.bf16 %v1271_v22, %v1270_v20  ;;  %v2086_v35 = vpop.f32.mrb[20].mxu1 }
 0x465   : > { %v1232_v37 = vadd.f32 %v2086_v35, %v3324_v23  ;;  %v1223_v27 = vpop.f32.mrb[21].mxu1 }
 0x466   : > { %v1224_v29 = vadd.f32 %v3324_v23, %v1223_v27  ;;  %v2087_v38 = vpop.f32.mrb[22].mxu1  ;;  %2238 = vmatpush3.bf16.msra.mxu0 %v3332_v28  ;;  %2262 = vmatpush3.bf16.msra.mxu1 %v3332_v28 }
 0x467   : > { %v1235_v31 = vadd.f32 %v2087_v38, %v3324_v23  ;;  %v1226_v30 = vpop.f32.mrb[23].mxu1  ;;  %2239 = vmatprep.subr.bf16.mxu0 %v2749_v4  ;;  %2263 = vmatprep.subr.bf16.mxu1 %v2749_v4  ;;  %v1276_v40 = vmax.f32 %v1232_v37, 0.0 }
 0x468   : > { %v1227_v33 = vadd.f32 %v3324_v23, %v1226_v30  ;;  %v1274_v36 = vmax.f32 %v1224_v29, 0.0 }
 0x469   : > { %v1277_v34 = vmax.f32 %v1235_v31, 0.0 }
 0x46a   : > { %v1275_v32 = vmax.f32 %v1227_v33, 0.0  ;;  %2241 = vmatpush3.bf16.msra.mxu0 %v3330_v25  ;;  %2265 = vmatpush3.bf16.msra.mxu1 %v3330_v25 }
 0x46b   : > { %v3344_v39 = vpack.c.bf16 %v1277_v34, %v1276_v40  ;;  %2242 = vmatprep.subr.bf16.mxu0 %v2749_v4  ;;  %2266 = vmatprep.subr.bf16.mxu1 %v2749_v4 }
 0x46c   : > { %v3348_v41 = vpack.c.bf16 %v1275_v32, %v1274_v36  ;;  %v2090_v43 = vpop.f32.mrb[24].mxu1 }
 0x46d   : > { %v1248_v44 = vadd.f32 %v2090_v43, %v3324_v23  ;;  %v1239_v45 = vpop.f32.mrb[25].mxu1 }
 0x46e   : > { %v1240_v47 = vadd.f32 %v3324_v23, %v1239_v45  ;;  %v2091_v48 = vpop.f32.mrb[26].mxu1  ;;  %2244 = vmatpush3.bf16.msra.mxu0 %v3348_v41  ;;  %2268 = vmatpush3.bf16.msra.mxu1 %v3348_v41 }
 0x46f   : > { %v1251_v50 = vadd.f32 %v2091_v48, %v3324_v23  ;;  %v1242_v46 = vpop.f32.mrb[27].mxu1  ;;  %2245 = vmatprep.subr.bf16.mxu0 %v2749_v4  ;;  %2269 = vmatprep.subr.bf16.mxu1 %v2749_v4  ;;  %v1280_v55 = vmax.f32 %v1248_v44, 0.0 }
 0x470   : > { %v1243_v53 = vadd.f32 %v3324_v23, %v1242_v46  ;;  %v1278_v56 = vmax.f32 %v1240_v47, 0.0 }
 0x471   : > { %v1281_v49 = vmax.f32 %v1251_v50, 0.0 }
 0x472   : > { %v1279_v51 = vmax.f32 %v1243_v53, 0.0  ;;  %2247 = vmatpush3.bf16.msra.mxu0 %v3344_v39  ;;  %2271 = vmatpush3.bf16.msra.mxu1 %v3344_v39 }
 0x473   : > { %v3360_v52 = vpack.c.bf16 %v1281_v49, %v1280_v55  ;;  %2248 = vmatprep.subr.bf16.mxu0 %v2749_v4  ;;  %2272 = vmatprep.subr.bf16.mxu1 %v2749_v4 }
 0x474   : > { %v2249_v58 = vpack.c.bf16 %v1279_v51, %v1278_v56  ;;  %v2094_v59 = vpop.f32.mrb[28].mxu1 }
 0x475   : > { %v1264_v54 = vadd.f32 %v2094_v59, %v3324_v23  ;;  %v1255_v21 = vpop.f32.mrb[29].mxu1 }
 0x476   : > { %v1256_v61 = vadd.f32 %v3324_v23, %v1255_v21  ;;  %v2095_v62 = vpop.f32.mrb[30].mxu1  ;;  %2250 = vmatpush3.bf16.msra.mxu0 %v2249_v58  ;;  %2274 = vmatpush3.bf16.msra.mxu1 %v2249_v58 }
 0x477   : > { %v1267_v24 = vadd.f32 %v2095_v62, %v3324_v23  ;;  %v1258_v60 = vpop.f32.mrb[31].mxu1  ;;  %2251 = vmatprep.subr.bf16.mxu0 %v2749_v4  ;;  %2275 = vmatprep.subr.bf16.mxu1 %v2749_v4  ;;  %v1284_v3 = vmax.f32 %v1264_v54, 0.0 }
 0x478   : > { %v1259_v26 = vadd.f32 %v3324_v23, %v1258_v60  ;;  %v1282_v6 = vmax.f32 %v1256_v61, 0.0  ;;  %v1292_v23 = vrot.slane %v1286_v8, %v1291_v1 }
 0x479   : > { %v1285_v5 = vmax.f32 %v1267_v24, 0.0 }
 0x47a   : > { %v1283_v63 = vmax.f32 %v1259_v26, 0.0  ;;  %2253 = vmatpush3.bf16.msra.mxu0 %v3360_v52  ;;  %2277 = vmatpush3.bf16.msra.mxu1 %v3360_v52  ;;  %vm1293_vm1 = vcmp.eq.s32.totalorder %v1292_v23, %v3366_v0 }
 0x47b   : > { %v2258_v2 = vpack.c.bf16 %v1285_v5, %v1284_v3  ;;  %2254 = vmatprep.subr.bf16.mxu0 %v2749_v4  ;;  %2278 = vmatprep.subr.bf16.mxu1 %v2749_v4 }
 0x47c   : > { %v2255_v9 = vpack.c.bf16 %v1283_v63, %v1282_v6 }
 0x47e   : > { %2256 = vmatpush3.bf16.msra.mxu0 %v2255_v9  ;;  %2280 = vmatpush3.bf16.msra.mxu1 %v2255_v9 }
 0x47f   : > { %2257 = vmatprep.subr.bf16.mxu0 %v2749_v4  ;;  %2281 = vmatprep.subr.bf16.mxu1 %v2749_v4 }
 0x482   : > { %2259 = vmatpush3.bf16.msra.mxu0 %v2258_v2  ;;  %2283 = vmatpush3.bf16.msra.mxu1 %v2258_v2 }
 0x483   : > { %2284 = vmatprep.subr.bf16.mxu0 %v2749_v4  ;;  %2308 = vmatprep.subr.bf16.mxu1 %v2749_v4 }
 0x485   : > { %2129 = vmatmul.mubr.msk.f32.vlgmr.msra.gmra.mrb[32].mxu0 %vm1293_vm1, %v2752_v12  ;;  %2164 = vmatmul.mubr.msk.f32.vlgmr.msra.gmra.mrb[32].mxu1 %vm1373_vm2, %v2752_v12 }
 0x486   : > { %2286 = vmatpush3.bf16.msra.mxu0 %v3332_v28  ;;  %2310 = vmatpush3.bf16.msra.mxu1 %v3332_v28  ;;  %v1826_v28 = vld [vmem:[%s3311_s29 + $0x6] sm:$0x3] }
 0x487   : > { %2287 = vmatprep.subr.bf16.mxu0 %v2749_v4  ;;  %2311 = vmatprep.subr.bf16.mxu1 %v2749_v4 }
 0x488   : > { %2198 = vmatprep.mubr.msk.f32.mxu0 %vm2750_vm0, %v2751_v42  ;;  %2233 = vmatprep.mubr.msk.f32.mxu1 %vm2750_vm0, %v2751_v42  ;;  %v1452_v42 = vsub.s32 2, %v3366_v0 }
 0x48a   : > { %2289 = vmatpush3.bf16.msra.mxu0 %v3330_v25  ;;  %2313 = vmatpush3.bf16.msra.mxu1 %v3330_v25  ;;  %v1453_v13 = vrot.slane %v1286_v8, %v1452_v42  ;;  %v1822_v25 = vld [vmem:[%s3311_s29 + $0x4] sm:$0x3] }
 0x48b   : > { %2290 = vmatprep.subr.bf16.mxu0 %v2749_v4  ;;  %2314 = vmatprep.subr.bf16.mxu1 %v2749_v4 }
 0x48c   : > { %vm1454_vm3 = vcmp.eq.s32.totalorder %v1453_v13, %v3366_v0 }
 0x48e   : > { %2292 = vmatpush3.bf16.msra.mxu0 %v3348_v41  ;;  %2316 = vmatpush3.bf16.msra.mxu1 %v3348_v41 }
 0x48f   : > { %2293 = vmatprep.subr.bf16.mxu0 %v2749_v4  ;;  %2317 = vmatprep.subr.bf16.mxu1 %v2749_v4 }
 0x492   : > { %2295 = vmatpush3.bf16.msra.mxu0 %v3344_v39  ;;  %2319 = vmatpush3.bf16.msra.mxu1 %v3344_v39 }
 0x493   : > { %2296 = vmatprep.subr.bf16.mxu0 %v2749_v4  ;;  %2320 = vmatprep.subr.bf16.mxu1 %v2749_v4 }
 0x496   : > { %2298 = vmatpush3.bf16.msra.mxu0 %v2249_v58  ;;  %2322 = vmatpush3.bf16.msra.mxu1 %v2249_v58 }
 0x497   : > { %2299 = vmatprep.subr.bf16.mxu0 %v2749_v4  ;;  %2323 = vmatprep.subr.bf16.mxu1 %v2749_v4 }
 0x49a   : > { %2301 = vmatpush3.bf16.msra.mxu0 %v3360_v52  ;;  %2325 = vmatpush3.bf16.msra.mxu1 %v3360_v52 }
 0x49b   : > { %2302 = vmatprep.subr.bf16.mxu0 %v2749_v4  ;;  %2326 = vmatprep.subr.bf16.mxu1 %v2749_v4 }
 0x49e   : > { %2304 = vmatpush3.bf16.msra.mxu0 %v2255_v9  ;;  %2328 = vmatpush3.bf16.msra.mxu1 %v2255_v9 }
 0x49f   : > { %2305 = vmatprep.subr.bf16.mxu0 %v2749_v4  ;;  %2329 = vmatprep.subr.bf16.mxu1 %v2749_v4 }
 0x4a2   : > { %2307 = vmatpush3.bf16.msra.mxu0 %v2258_v2  ;;  %2331 = vmatpush3.bf16.msra.mxu1 %v2258_v2 }
 0x4a5   : > { %2199 = vmatmul.mubr.msk.f32.vlgmr.msra.gmra.mrb[34].mxu0 %vm1454_vm3, %v2752_v12  ;;  %2234 = vmatmul.mubr.msk.f32.vlgmr.msra.gmra.mrb[34].mxu1 %vm1535_vm4, %v2752_v12 }
 0x558   : > { %v1363_v17 = vpop.f32.mrb[32].mxu0  ;;  %v1444_v18 = vpop.f32.mrb[32].mxu1 }
 0x559   : > { %v1367_v19 = vadd.f32 %v1363_v17, %v1296_v15  ;;  %v1448_v20 = vadd.f32 %v1818_v16, %v1444_v18  ;;  %v2130_v4 = vpop.f32.mrb[33].mxu0  ;;  %v2165_v22 = vpop.f32.mrb[33].mxu1 }
 0x55b   : > { %1368 = vst [vmem:[%s3311_s29] sm:$0x3] %v1367_v19  ;;  %1820 = vst [vmem:[%s3311_s29 + $0x2] sm:$0x3] %v1448_v20 }
 0x578   : > { %v1525_v35 = vpop.f32.mrb[34].mxu0  ;;  %v1606_v37 = vpop.f32.mrb[34].mxu1 }
 0x579   : > { %v1529_v27 = vadd.f32 %v1822_v25, %v1525_v35  ;;  %v1610_v29 = vadd.f32 %v1826_v28, %v1606_v37  ;;  %v2200_v38 = vpop.f32.mrb[35].mxu0  ;;  %v2235_v31 = vpop.f32.mrb[35].mxu1 }
 0x57b   : > { %1824 = vst [vmem:[%s3311_s29 + $0x4] sm:$0x3] %v1529_v27  ;;  %1828 = vst [vmem:[%s3311_s29 + $0x6] sm:$0x3] %v1610_v29 }
 0x57c   : > { %2659 = shalt.err (!%p2656_p5)
}
 0x57d   : > { %s2660_s24 = scalar_lea.hbm %s3428_s19, 128  ;;  %s2664_s29 = scalar_lea.hbm %s3532_s6, 256 }
 0x57e   : > { %p2661_p6 = scmp.ne.s32.totalorder %s3428_s19, %s2660_s24  ;;  %p2665_p12 = scmp.lt.u32.totalorder %s3428_s19, %s3532_s6 }
 0x57f   : > { %p2666_p11 = scmp.lt.u32.totalorder %s2664_s29, %s2660_s24  ;;  %p2668_p0 = scmp.lt.u32.totalorder %s2660_s24, %s3428_s19 }
 0x580   : > { %p2662_p10 = pnand %p2661_p6, %p3533_p2 }
 0x581   : > { %p2667_p9 = por %p2666_p11, %p2665_p12 }
 0x582   : > { %p2663_p7 = pneg %p2662_p10 }
 0x583   : > { %p2669_p4 = por %p2668_p0, %p2667_p9 }
 0x585   : > { %p2670_p8 = pnand %p2669_p4, %p2663_p7 }
 0x587   : > { %2673 = shalt.err (!%p2670_p8)
}
 0x588   : > { %s2754_s16 = smov 32   ;;  %s2755_s21 = smov 2  }
 0x589   : > { %2348 = dma.vmem_to_hbm [thread:$0]  (%p3533_p2), %s3430_s18, 128, %s3428_s19, %s1613_s8, %s2754_s16, %s2754_s16, %s2755_s21  }
 0x58a PF: > { %s3534_s12 = sld [smem:[#allocation17_spill]]  ;;  %s3535_s28 = sld [smem:[#allocation19_spill]] }
 0x58b   : > { %p3537_p13 = scmp.ge.s32.totalorder %s2740_s14, 2 }
 0x590   : > { %s1641_s0 = sand.u32 1, %s3534_s12   ;;  %p3536_p1 = scmp.ne.s32.totalorder %s3535_s28, 0 }
 0x591   : > { %s1642_s15 = scalar_lea.sflag [#allocation4], %s1641_s0 }
 0x592   : > { %p2368_p3 = pnand %p3537_p13, %p3536_p1 }
 0x594   : > { %2715 = dma.done.wait (!%p2368_p3), %s1642_s15, 128  }
 0x595   : > { %2717 = vsyncadd (!%p2368_p3), %s1642_s15, 4294967168  ;;  %s29_s14 = sadd.s32 1, %s2740_s14   ;;  %s3538_s30 = smov %s2724_s10 }
 0x596   : > { %p26_p5 = scmp.ge.s32.totalorder %s29_s14, 4   ;;  %s3539_s10 = smov %s2728_s11 }
 0x597   : > { %s3540_s11 = smov %s2977_s20  ;;  %s3541_s12 = smov %s2736_s13 }
 0x598   : > { %s3542_s13 = smov %s3544_s22  ;;  %28 = sbr.rel (!%p26_p5) target bundleno = 16 (0x10), region = 133 }
 0x59f   :  { %1647 = vsyncpa [#allocation3], 1 }
 0x5a0   :  { %1649 = vsyncpa [#allocation3 + $0x1], 1 }
 0x5a1   :  { %1650 = vsyncpa [#allocation6], 1 }
 0x5a2   :  { %1652 = vsyncpa [#allocation6 + $0x1], 1 }
 0x5a3   :  { %1653 = vsyncpa [#allocation9], 1 }
 0x5a4   :  { %1654 = vsyncpa [#allocation4], 1 }
 0x5a5   :  { %1656 = vsyncpa [#allocation4 + $0x1], 1 }

</bundles_post_ra>
